<compile_context>
chip_gen: v5e
topology: v5e:2x2
jax: 0.10.0
libtpu: 0.0.40
codegen_flags: <defaults>
</compile_context>

<pallas_src>
import math

import jax
import jax.numpy as jnp
from jax import lax
from jax.experimental import pallas as pl
from jax.experimental.pallas import tpu as pltpu

# ----------------------- small BERT-like config -----------------------------
VOCAB = 100
HIDDEN = 32
N_HEADS = 2
HEAD_DIM = HIDDEN // N_HEADS
N_LAYERS = 2
INTERMEDIATE = 64
MAX_POS = 16
TYPE_VOCAB = 2
LN_EPS = 1e-12  # BERT LayerNorm eps

# Row indices inside the packed per-layer vector slab (L, 8, 3*HIDDEN).
_VEC_W = 3 * HIDDEN
ROW_BQKV, ROW_B1, ROW_BO, ROW_LN1G, ROW_LN1B, ROW_B2, ROW_LN2G, ROW_LN2B = range(8)
N_VEC_ROWS = 8


# ------------------------------ shared math ----------------------------------
def _layernorm(x, g, b):
    mu = jnp.mean(x, axis=-1, keepdims=True)
    var = jnp.mean(jnp.square(x - mu), axis=-1, keepdims=True)
    return (x - mu) * lax.rsqrt(var + LN_EPS) * g + b


_SQRT_2_OVER_PI = math.sqrt(2.0 / math.pi)


def _gelu_tanh(x):
    # tanh-approximate GELU: one EUP op instead of a long erf VALU polynomial.
    return 0.5 * x * (1.0 + jnp.tanh(_SQRT_2_OVER_PI * (x + 0.044715 * x * x * x)))


def _gelu_erf(x):
    # exact (erf) GELU, used only by the pure-JAX reference (HF BERT default).
    return 0.5 * x * (1.0 + lax.erf(x * (1.0 / math.sqrt(2.0))))


# --------------------------- fused encoder kernel ----------------------------
def _encoder_kernel(h0_ref, mask_ref, wqkv_ref, wo_ref, w1_ref, w2_ref,
                    vec_ref, embln_ref, cls_ref):
    """One grid step = BATCH_TILE batch elements through the whole encoder."""
    BT, S, _ = h0_ref.shape
    rows = BT * S
    scale = 1.0 / math.sqrt(HEAD_DIM)

    # Embedding LayerNorm on the batch-folded (BT*S, H) slab.
    h0 = h0_ref[...].reshape(rows, HIDDEN).astype(jnp.float32)
    h = _layernorm(h0, embln_ref[0:1, :], embln_ref[1:2, :])        # (rows, H)

    for l in range(N_LAYERS):
        # Per-layer packed vectors (all slices are prefix lane / sublane slices).
        vec = vec_ref[l]                                            # (8, 3H)
        bqkv = vec[ROW_BQKV:ROW_BQKV + 1, :]                        # (1, 3H)
        b1 = vec[ROW_B1:ROW_B1 + 1, :INTERMEDIATE]                  # (1, I)
        bo = vec[ROW_BO:ROW_BO + 1, :HIDDEN]                        # (1, H)
        ln1_g = vec[ROW_LN1G:ROW_LN1G + 1, :HIDDEN]
        ln1_b = vec[ROW_LN1B:ROW_LN1B + 1, :HIDDEN]
        b2 = vec[ROW_B2:ROW_B2 + 1, :HIDDEN]
        ln2_g = vec[ROW_LN2G:ROW_LN2G + 1, :HIDDEN]
        ln2_b = vec[ROW_LN2B:ROW_LN2B + 1, :HIDDEN]

        wo_l = wo_ref[l]                                            # (H, H)
        wo_slabs = [wo_l[hh * HEAD_DIM:(hh + 1) * HEAD_DIM, :]      # (HD, H)
                    for hh in range(N_HEADS)]

        # Fused QKV projection over the whole folded batch: (BT*S, H) @ (H, 3H).
        qkv = (jnp.dot(h, wqkv_ref[l], preferred_element_type=jnp.float32)
               + bqkv)                                              # (rows, 3H)

        # Per-batch, per-head attention (masks differ per batch element).
        attn_rows = []
        for b in range(BT):
            qkv_b = qkv[b * S:(b + 1) * S, :]                       # (S, 3H)
            bias_b = mask_ref[b]                                    # (1, S)
            acc_b = None
            for hh in range(N_HEADS):
                q = qkv_b[:, hh * HEAD_DIM:(hh + 1) * HEAD_DIM]
                k = qkv_b[:, HIDDEN + hh * HEAD_DIM:
                             HIDDEN + (hh + 1) * HEAD_DIM]
                v = qkv_b[:, 2 * HIDDEN + hh * HEAD_DIM:
                             2 * HIDDEN + (hh + 1) * HEAD_DIM]
                # q @ k^T without materializing a transpose (NT dot_general).
                s = lax.dot_general(q, k, (((1,), (1,)), ((), ())),
                                    preferred_element_type=jnp.float32)
                s = s * scale + bias_b
                s = s - jnp.max(s, axis=-1, keepdims=True)
                p = jnp.exp(s)
                p = p * pl.reciprocal(jnp.sum(p, axis=-1, keepdims=True),
                                      approx=True)
                ctx = jnp.dot(p, v, preferred_element_type=jnp.float32)  # (S, HD)
                # Per-head Wo row-slab accumulation (no lane-axis concat).
                part = jnp.dot(ctx, wo_slabs[hh],
                               preferred_element_type=jnp.float32)       # (S, H)
                acc_b = part if acc_b is None else acc_b + part
            attn_rows.append(acc_b)
        attn = jnp.concatenate(attn_rows, axis=0) + bo              # (rows, H)

        h1 = _layernorm(attn + h, ln1_g, ln1_b)

        ff = jnp.dot(h1, w1_ref[l], preferred_element_type=jnp.float32) + b1
        ff = _gelu_tanh(ff)
        ff = jnp.dot(ff, w2_ref[l], preferred_element_type=jnp.float32) + b2
        h = _layernorm(ff + h1, ln2_g, ln2_b)

    # Only the CLS row of each batch element is returned.
    for b in range(BT):
        cls_ref[b] = h[b * S:b * S + 1, :].astype(cls_ref.dtype)


def _full_spec(x):
    """Whole-array BlockSpec with a constant index map (DMA'd once)."""
    ndim = x.ndim
    return pl.BlockSpec(x.shape, lambda t, _n=ndim: (0,) * _n)


# ----------------------- deterministic parameter init -----------------------
def init_params(key):
    keys = iter(jax.random.split(key, 7))

    def dense(shape):
        return jax.random.normal(next(keys), shape, jnp.float32) * 0.02

    L, H, I = N_LAYERS, HIDDEN, INTERMEDIATE
    return {
        "word_emb": dense((VOCAB, H)),
        "pos_emb": dense((MAX_POS, H)),
        "type_emb": dense((TYPE_VOCAB, H)),
        "emb_ln_g": jnp.ones((1, H), jnp.float32),
        "emb_ln_b": jnp.zeros((1, H), jnp.float32),
        # Fused QKV weight / bias, stacked across layers.
        "wqkv": dense((L, H, 3 * H)),
        "bqkv": jnp.zeros((L, 1, 3 * H), jnp.float32),
        "wo": dense((L, H, H)),
        "bo": jnp.zeros((L, 1, H), jnp.float32),
        "ln1_g": jnp.ones((L, 1, H), jnp.float32),
        "ln1_b": jnp.zeros((L, 1, H), jnp.float32),
        "w1": dense((L, H, I)),
        "b1": jnp.zeros((L, 1, I), jnp.float32),
        "w2": dense((L, I, H)),
        "b2": jnp.zeros((L, 1, H), jnp.float32),
        "ln2_g": jnp.ones((L, 1, H), jnp.float32),
        "ln2_b": jnp.zeros((L, 1, H), jnp.float32),
    }


def pack_params(params):
    """Pack the 14 tiny bias/LN vectors into 2 slabs (done once, not per call)."""
    W = _VEC_W

    def row(v):  # (L, 1, k) -> (L, 1, 3H), zero-padded on the lane axis
        return jnp.pad(v, ((0, 0), (0, 0), (0, W - v.shape[-1])))

    vec_pack = jnp.concatenate(
        [row(params["bqkv"]), row(params["b1"]), row(params["bo"]),
         row(params["ln1_g"]), row(params["ln1_b"]), row(params["b2"]),
         row(params["ln2_g"]), row(params["ln2_b"])], axis=1)   # (L, 8, 3H)
    emb_ln = jnp.concatenate([params["emb_ln_g"], params["emb_ln_b"]],
                             axis=0)                            # (2, H)
    return {
        "word_emb": params["word_emb"],
        "pos_emb": params["pos_emb"],
        "type_emb": params["type_emb"],
        "wqkv": params["wqkv"],
        "wo": params["wo"],
        "w1": params["w1"],
        "w2": params["w2"],
        "vec_pack": vec_pack,
        "emb_ln": emb_ln,
    }


# ------------------------------- forward ------------------------------------
def text_encoder_forward(packed, input_ids, attention_mask, *, batch_tile=None):
    """Equivalent of bert(input_ids, attention_mask).last_hidden_state[:, 0, :]."""
    B, S = input_ids.shape
    BT = B if batch_tile is None else min(batch_tile, B)
    assert B % BT == 0

    # Embedding sum (gather is JAX glue), built once.
    h0 = (jnp.take(packed["word_emb"], input_ids, axis=0)
          + packed["pos_emb"][None, :S, :]
          + packed["type_emb"][0][None, None, :])               # (B, S, H)

    # BERT extended attention mask: (1 - mask) * -1e4, broadcast over queries.
    mask_bias = ((1.0 - attention_mask.astype(jnp.float32)) * -10000.0
                 ).reshape(B, 1, S)

    weights = [packed["wqkv"], packed["wo"], packed["w1"], packed["w2"],
               packed["vec_pack"], packed["emb_ln"]]

    # Whole batch folded into one grid step (grid=(1,) here); weights use
    # constant index maps so they live in VMEM for the whole kernel.
    # TODO(synk): for large B on v7x, chunk batch over a leading
    # pltpu.CORE_PARALLEL axis to use both TensorCores.
    out = pl.pallas_call(
        _encoder_kernel,
        out_shape=jax.ShapeDtypeStruct((B, 1, HIDDEN), jnp.float32),
        grid=(B // BT,),
        in_specs=[pl.BlockSpec((BT, S, HIDDEN), lambda t: (t, 0, 0)),
                  pl.BlockSpec((BT, 1, S), lambda t: (t, 0, 0))]
                 + [_full_spec(w) for w in weights],
        out_specs=pl.BlockSpec((BT, 1, HIDDEN), lambda t: (t, 0, 0)),
        compiler_params=pltpu.CompilerParams(
            dimension_semantics=("parallel",)),
    )(h0, mask_bias, *weights)

    return out[:, 0, :]                                          # (B, H) [CLS]


# --------------------------- pure-JAX reference ------------------------------
def _reference_forward(params, input_ids, attention_mask):
    B, S = input_ids.shape
    h = (jnp.take(params["word_emb"], input_ids, axis=0)
         + params["pos_emb"][None, :S, :]
         + params["type_emb"][0][None, None, :])
    h = _layernorm(h, params["emb_ln_g"], params["emb_ln_b"])
    bias = ((1.0 - attention_mask.astype(jnp.float32))
            * -10000.0)[:, None, None, :]                        # (B,1,1,S)
    scale = 1.0 / math.sqrt(HEAD_DIM)
    for l in range(N_LAYERS):
        qkv = h @ params["wqkv"][l] + params["bqkv"][l]          # (B,S,3H)

        def heads(x):
            return x.reshape(B, S, N_HEADS, HEAD_DIM).transpose(0, 2, 1, 3)

        q = heads(qkv[..., :HIDDEN])
        k = heads(qkv[..., HIDDEN:2 * HIDDEN])
        v = heads(qkv[..., 2 * HIDDEN:])
        s = jnp.einsum("bhqd,bhkd->bhqk", q, k) * scale + bias
        p = jax.nn.softmax(s, axis=-1)
        ctx = jnp.einsum("bhqk,bhkd->bhqd", p, v)
        ctx = ctx.transpose(0, 2, 1, 3).reshape(B, S, HIDDEN)
        attn = ctx @ params["wo"][l] + params["bo"][l]
        h1 = _layernorm(attn + h, params["ln1_g"][l], params["ln1_b"][l])
        ff = _gelu_erf(h1 @ params["w1"][l] + params["b1"][l])
        ff = ff @ params["w2"][l] + params["b2"][l]
        h = _layernorm(ff + h1, params["ln2_g"][l], params["ln2_b"][l])
    return h[:, 0, :]


# --------------------------------- main --------------------------------------
if __name__ == "__main__":
    key = jax.random.PRNGKey(0)
    pkey, ikey = jax.random.split(key)
    params = init_params(pkey)
    packed = pack_params(params)

    B, S = 2, 8
    input_ids = jax.random.randint(ikey, (B, S), 0, VOCAB, dtype=jnp.int32)
    attention_mask = jnp.array([[1, 1, 1, 1, 1, 1, 1, 1],
                                [1, 1, 1, 1, 1, 1, 0, 0]], dtype=jnp.int32)

    fwd = jax.jit(text_encoder_forward)
    out = jax.block_until_ready(fwd(packed, input_ids, attention_mask))
    assert out.shape == (B, HIDDEN) and out.dtype == jnp.float32

    ref = _reference_forward(params, input_ids, attention_mask)
    max_err = float(jnp.max(jnp.abs(out - ref)))
    assert max_err < 5e-3, f"mismatch vs pure-JAX reference: {max_err}"

    print("KERNEL_OK")
</pallas_src>

<mosaic_0001>
module attributes {stable_mosaic.version = 11 : i64} {
  func.func @_encoder_kernel(%arg0: i32, %arg1: memref<2x8x32xf32, #tpu.memory_space<vmem>>, %arg2: memref<2x1x8xf32, #tpu.memory_space<vmem>>, %arg3: memref<2x32x96xf32, #tpu.memory_space<vmem>>, %arg4: memref<2x32x32xf32, #tpu.memory_space<vmem>>, %arg5: memref<2x32x64xf32, #tpu.memory_space<vmem>>, %arg6: memref<2x64x32xf32, #tpu.memory_space<vmem>>, %arg7: memref<2x8x96xf32, #tpu.memory_space<vmem>>, %arg8: memref<2x32xf32, #tpu.memory_space<vmem>>, %arg9: memref<2x1x32xf32, #tpu.memory_space<vmem>>) attributes {dimension_semantics = [#tpu.dimension_semantics<parallel>], iteration_bounds = array<i64: 1>, scalar_prefetch = 0 : i64, scratch_operands = 0 : i64, tpu.core_type = #tpu.core_type<tc>, window_params = [{transform_indices = @transform_0, window_bounds = array<i64: 2, 8, 32>}, {transform_indices = @transform_1, window_bounds = array<i64: 2, 1, 8>}, {pipeline_mode = #tpu.pipeline_mode<synchronous>, transform_indices = @transform_2, window_bounds = array<i64: 2, 32, 96>}, {pipeline_mode = #tpu.pipeline_mode<synchronous>, transform_indices = @transform_3, window_bounds = array<i64: 2, 32, 32>}, {pipeline_mode = #tpu.pipeline_mode<synchronous>, transform_indices = @transform_4, window_bounds = array<i64: 2, 32, 64>}, {pipeline_mode = #tpu.pipeline_mode<synchronous>, transform_indices = @transform_5, window_bounds = array<i64: 2, 64, 32>}, {pipeline_mode = #tpu.pipeline_mode<synchronous>, transform_indices = @transform_6, window_bounds = array<i64: 2, 8, 96>}, {pipeline_mode = #tpu.pipeline_mode<synchronous>, transform_indices = @transform_7, window_bounds = array<i64: 2, 32>}, {transform_indices = @transform_8, window_bounds = array<i64: 2, 1, 32>}]} {
    %c0 = arith.constant 0 : index
    %c0_0 = arith.constant 0 : index
    %c0_1 = arith.constant 0 : index
    %0 = vector.load %arg1[%c0, %c0_0, %c0_1] : memref<2x8x32xf32, #tpu.memory_space<vmem>>, vector<2x8x32xf32>
    %1 = vector.shape_cast %0 : vector<2x8x32xf32> to vector<16x32xf32>
    %c0_2 = arith.constant 0 : index
    %c0_3 = arith.constant 0 : index
    %2 = vector.load %arg8[%c0_2, %c0_3] : memref<2x32xf32, #tpu.memory_space<vmem>>, vector<1x32xf32>
    %c1 = arith.constant 1 : index
    %c0_4 = arith.constant 0 : index
    %3 = vector.load %arg8[%c1, %c0_4] : memref<2x32xf32, #tpu.memory_space<vmem>>, vector<1x32xf32>
    %cst = arith.constant dense<0.000000e+00> : vector<16xf32>
    %4 = vector.multi_reduction <add>, %1, %cst [1] : vector<16x32xf32> to vector<16xf32>
    %5 = vector.shape_cast %4 : vector<16xf32> to vector<16x1xf32>
    %cst_5 = arith.constant 3.200000e+01 : f32
    %6 = vector.broadcast %cst_5 : f32 to vector<16x1xf32>
    %7 = arith.divf %5, %6 : vector<16x1xf32>
    %8 = vector.broadcast %7 : vector<16x1xf32> to vector<16x32xf32>
    %9 = arith.subf %1, %8 : vector<16x32xf32>
    %10 = arith.mulf %9, %9 : vector<16x32xf32>
    %cst_6 = arith.constant dense<0.000000e+00> : vector<16xf32>
    %11 = vector.multi_reduction <add>, %10, %cst_6 [1] : vector<16x32xf32> to vector<16xf32>
    %12 = vector.shape_cast %11 : vector<16xf32> to vector<16x1xf32>
    %cst_7 = arith.constant 3.200000e+01 : f32
    %13 = vector.broadcast %cst_7 : f32 to vector<16x1xf32>
    %14 = arith.divf %12, %13 : vector<16x1xf32>
    %15 = vector.broadcast %7 : vector<16x1xf32> to vector<16x32xf32>
    %16 = arith.subf %1, %15 : vector<16x32xf32>
    %cst_8 = arith.constant 9.99999996E-13 : f32
    %17 = vector.broadcast %cst_8 : f32 to vector<16x1xf32>
    %18 = arith.addf %14, %17 : vector<16x1xf32>
    %19 = math.rsqrt %18 : vector<16x1xf32>
    %20 = vector.broadcast %19 : vector<16x1xf32> to vector<16x32xf32>
    %21 = arith.mulf %16, %20 : vector<16x32xf32>
    %22 = vector.broadcast %2 : vector<1x32xf32> to vector<16x32xf32>
    %23 = arith.mulf %21, %22 : vector<16x32xf32>
    %24 = vector.broadcast %3 : vector<1x32xf32> to vector<16x32xf32>
    %25 = arith.addf %23, %24 : vector<16x32xf32>
    %c0_9 = arith.constant 0 : index
    %c0_10 = arith.constant 0 : index
    %c0_11 = arith.constant 0 : index
    %26 = vector.load %arg7[%c0_9, %c0_10, %c0_11] : memref<2x8x96xf32, #tpu.memory_space<vmem>>, vector<1x8x96xf32>
    %27 = vector.shape_cast %26 : vector<1x8x96xf32> to vector<8x96xf32>
    %28 = vector.extract_strided_slice %27 {offsets = [0, 0], sizes = [1, 96], strides = [1, 1]} : vector<8x96xf32> to vector<1x96xf32>
    %29 = vector.extract_strided_slice %27 {offsets = [1, 0], sizes = [1, 64], strides = [1, 1]} : vector<8x96xf32> to vector<1x64xf32>
    %30 = vector.extract_strided_slice %27 {offsets = [2, 0], sizes = [1, 32], strides = [1, 1]} : vector<8x96xf32> to vector<1x32xf32>
    %31 = vector.extract_strided_slice %27 {offsets = [3, 0], sizes = [1, 32], strides = [1, 1]} : vector<8x96xf32> to vector<1x32xf32>
    %32 = vector.extract_strided_slice %27 {offsets = [4, 0], sizes = [1, 32], strides = [1, 1]} : vector<8x96xf32> to vector<1x32xf32>
    %33 = vector.extract_strided_slice %27 {offsets = [5, 0], sizes = [1, 32], strides = [1, 1]} : vector<8x96xf32> to vector<1x32xf32>
    %34 = vector.extract_strided_slice %27 {offsets = [6, 0], sizes = [1, 32], strides = [1, 1]} : vector<8x96xf32> to vector<1x32xf32>
    %35 = vector.extract_strided_slice %27 {offsets = [7, 0], sizes = [1, 32], strides = [1, 1]} : vector<8x96xf32> to vector<1x32xf32>
    %c0_12 = arith.constant 0 : index
    %c0_13 = arith.constant 0 : index
    %c0_14 = arith.constant 0 : index
    %36 = vector.load %arg4[%c0_12, %c0_13, %c0_14] : memref<2x32x32xf32, #tpu.memory_space<vmem>>, vector<1x32x32xf32>
    %37 = vector.shape_cast %36 : vector<1x32x32xf32> to vector<32x32xf32>
    %38 = vector.extract_strided_slice %37 {offsets = [0, 0], sizes = [16, 32], strides = [1, 1]} : vector<32x32xf32> to vector<16x32xf32>
    %39 = vector.extract_strided_slice %37 {offsets = [16, 0], sizes = [16, 32], strides = [1, 1]} : vector<32x32xf32> to vector<16x32xf32>
    %c0_15 = arith.constant 0 : index
    %c0_16 = arith.constant 0 : index
    %c0_17 = arith.constant 0 : index
    %40 = vector.load %arg3[%c0_15, %c0_16, %c0_17] : memref<2x32x96xf32, #tpu.memory_space<vmem>>, vector<1x32x96xf32>
    %41 = vector.shape_cast %40 : vector<1x32x96xf32> to vector<32x96xf32>
    %cst_18 = arith.constant dense<0.000000e+00> : vector<16x96xf32>
    %42 = tpu.matmul %25, %41, %cst_18 {dimension_numbers = #tpu.dot_dimension_numbers<[1], [0], [0], [1], [0, 0, 1, 1], [], []>} : vector<16x32xf32>, vector<32x96xf32>, vector<16x96xf32> -> vector<16x96xf32>
    %43 = vector.broadcast %28 : vector<1x96xf32> to vector<16x96xf32>
    %44 = arith.addf %42, %43 : vector<16x96xf32>
    %45 = vector.extract_strided_slice %44 {offsets = [0, 0], sizes = [8, 96], strides = [1, 1]} : vector<16x96xf32> to vector<8x96xf32>
    %c0_19 = arith.constant 0 : index
    %c0_20 = arith.constant 0 : index
    %c0_21 = arith.constant 0 : index
    %46 = vector.load %arg2[%c0_19, %c0_20, %c0_21] : memref<2x1x8xf32, #tpu.memory_space<vmem>>, vector<1x1x8xf32>
    %47 = vector.shape_cast %46 : vector<1x1x8xf32> to vector<1x8xf32>
    %48 = vector.extract_strided_slice %45 {offsets = [0, 0], sizes = [8, 16], strides = [1, 1]} : vector<8x96xf32> to vector<8x16xf32>
    %49 = vector.extract_strided_slice %45 {offsets = [0, 32], sizes = [8, 16], strides = [1, 1]} : vector<8x96xf32> to vector<8x16xf32>
    %50 = vector.extract_strided_slice %45 {offsets = [0, 64], sizes = [8, 16], strides = [1, 1]} : vector<8x96xf32> to vector<8x16xf32>
    %cst_22 = arith.constant dense<0.000000e+00> : vector<8x8xf32>
    %51 = tpu.matmul %48, %49, %cst_22 {dimension_numbers = #tpu.dot_dimension_numbers<[1], [1], [0], [0], [0, 0, 1, 0], [], []>} : vector<8x16xf32>, vector<8x16xf32>, vector<8x8xf32> -> vector<8x8xf32>
    %cst_23 = arith.constant 2.500000e-01 : f32
    %52 = vector.broadcast %cst_23 : f32 to vector<8x8xf32>
    %53 = arith.mulf %51, %52 : vector<8x8xf32>
    %54 = vector.broadcast %47 : vector<1x8xf32> to vector<8x8xf32>
    %55 = arith.addf %53, %54 : vector<8x8xf32>
    %cst_24 = arith.constant dense<0xFF800000> : vector<8xf32>
    %56 = vector.multi_reduction <maximumf>, %55, %cst_24 [1] : vector<8x8xf32> to vector<8xf32>
    %57 = vector.shape_cast %56 : vector<8xf32> to vector<8x1xf32>
    %58 = vector.broadcast %57 : vector<8x1xf32> to vector<8x8xf32>
    %59 = arith.subf %55, %58 : vector<8x8xf32>
    %60 = math.exp %59 : vector<8x8xf32>
    %cst_25 = arith.constant dense<0.000000e+00> : vector<8xf32>
    %61 = vector.multi_reduction <add>, %60, %cst_25 [1] : vector<8x8xf32> to vector<8xf32>
    %62 = vector.shape_cast %61 : vector<8xf32> to vector<8x1xf32>
    %63 = tpu.reciprocal %62 {approx = true} : vector<8x1xf32> -> vector<8x1xf32>
    %64 = vector.broadcast %63 : vector<8x1xf32> to vector<8x8xf32>
    %65 = arith.mulf %60, %64 : vector<8x8xf32>
    %cst_26 = arith.constant dense<0.000000e+00> : vector<8x16xf32>
    %66 = tpu.matmul %65, %50, %cst_26 {dimension_numbers = #tpu.dot_dimension_numbers<[1], [0], [0], [1], [0, 0, 1, 1], [], []>} : vector<8x8xf32>, vector<8x16xf32>, vector<8x16xf32> -> vector<8x16xf32>
    %cst_27 = arith.constant dense<0.000000e+00> : vector<8x32xf32>
    %67 = tpu.matmul %66, %38, %cst_27 {dimension_numbers = #tpu.dot_dimension_numbers<[1], [0], [0], [1], [0, 0, 1, 1], [], []>} : vector<8x16xf32>, vector<16x32xf32>, vector<8x32xf32> -> vector<8x32xf32>
    %68 = vector.extract_strided_slice %45 {offsets = [0, 16], sizes = [8, 16], strides = [1, 1]} : vector<8x96xf32> to vector<8x16xf32>
    %69 = vector.extract_strided_slice %45 {offsets = [0, 48], sizes = [8, 16], strides = [1, 1]} : vector<8x96xf32> to vector<8x16xf32>
    %70 = vector.extract_strided_slice %45 {offsets = [0, 80], sizes = [8, 16], strides = [1, 1]} : vector<8x96xf32> to vector<8x16xf32>
    %cst_28 = arith.constant dense<0.000000e+00> : vector<8x8xf32>
    %71 = tpu.matmul %68, %69, %cst_28 {dimension_numbers = #tpu.dot_dimension_numbers<[1], [1], [0], [0], [0, 0, 1, 0], [], []>} : vector<8x16xf32>, vector<8x16xf32>, vector<8x8xf32> -> vector<8x8xf32>
    %cst_29 = arith.constant 2.500000e-01 : f32
    %72 = vector.broadcast %cst_29 : f32 to vector<8x8xf32>
    %73 = arith.mulf %71, %72 : vector<8x8xf32>
    %74 = vector.broadcast %47 : vector<1x8xf32> to vector<8x8xf32>
    %75 = arith.addf %73, %74 : vector<8x8xf32>
    %cst_30 = arith.constant dense<0xFF800000> : vector<8xf32>
    %76 = vector.multi_reduction <maximumf>, %75, %cst_30 [1] : vector<8x8xf32> to vector<8xf32>
    %77 = vector.shape_cast %76 : vector<8xf32> to vector<8x1xf32>
    %78 = vector.broadcast %77 : vector<8x1xf32> to vector<8x8xf32>
    %79 = arith.subf %75, %78 : vector<8x8xf32>
    %80 = math.exp %79 : vector<8x8xf32>
    %cst_31 = arith.constant dense<0.000000e+00> : vector<8xf32>
    %81 = vector.multi_reduction <add>, %80, %cst_31 [1] : vector<8x8xf32> to vector<8xf32>
    %82 = vector.shape_cast %81 : vector<8xf32> to vector<8x1xf32>
    %83 = tpu.reciprocal %82 {approx = true} : vector<8x1xf32> -> vector<8x1xf32>
    %84 = vector.broadcast %83 : vector<8x1xf32> to vector<8x8xf32>
    %85 = arith.mulf %80, %84 : vector<8x8xf32>
    %cst_32 = arith.constant dense<0.000000e+00> : vector<8x16xf32>
    %86 = tpu.matmul %85, %70, %cst_32 {dimension_numbers = #tpu.dot_dimension_numbers<[1], [0], [0], [1], [0, 0, 1, 1], [], []>} : vector<8x8xf32>, vector<8x16xf32>, vector<8x16xf32> -> vector<8x16xf32>
    %cst_33 = arith.constant dense<0.000000e+00> : vector<8x32xf32>
    %87 = tpu.matmul %86, %39, %cst_33 {dimension_numbers = #tpu.dot_dimension_numbers<[1], [0], [0], [1], [0, 0, 1, 1], [], []>} : vector<8x16xf32>, vector<16x32xf32>, vector<8x32xf32> -> vector<8x32xf32>
    %88 = arith.addf %67, %87 : vector<8x32xf32>
    %89 = vector.extract_strided_slice %44 {offsets = [8, 0], sizes = [8, 96], strides = [1, 1]} : vector<16x96xf32> to vector<8x96xf32>
    %c1_34 = arith.constant 1 : index
    %c0_35 = arith.constant 0 : index
    %c0_36 = arith.constant 0 : index
    %90 = vector.load %arg2[%c1_34, %c0_35, %c0_36] : memref<2x1x8xf32, #tpu.memory_space<vmem>>, vector<1x1x8xf32>
    %91 = vector.shape_cast %90 : vector<1x1x8xf32> to vector<1x8xf32>
    %92 = vector.extract_strided_slice %89 {offsets = [0, 0], sizes = [8, 16], strides = [1, 1]} : vector<8x96xf32> to vector<8x16xf32>
    %93 = vector.extract_strided_slice %89 {offsets = [0, 32], sizes = [8, 16], strides = [1, 1]} : vector<8x96xf32> to vector<8x16xf32>
    %94 = vector.extract_strided_slice %89 {offsets = [0, 64], sizes = [8, 16], strides = [1, 1]} : vector<8x96xf32> to vector<8x16xf32>
    %cst_37 = arith.constant dense<0.000000e+00> : vector<8x8xf32>
    %95 = tpu.matmul %92, %93, %cst_37 {dimension_numbers = #tpu.dot_dimension_numbers<[1], [1], [0], [0], [0, 0, 1, 0], [], []>} : vector<8x16xf32>, vector<8x16xf32>, vector<8x8xf32> -> vector<8x8xf32>
    %cst_38 = arith.constant 2.500000e-01 : f32
    %96 = vector.broadcast %cst_38 : f32 to vector<8x8xf32>
    %97 = arith.mulf %95, %96 : vector<8x8xf32>
    %98 = vector.broadcast %91 : vector<1x8xf32> to vector<8x8xf32>
    %99 = arith.addf %97, %98 : vector<8x8xf32>
    %cst_39 = arith.constant dense<0xFF800000> : vector<8xf32>
    %100 = vector.multi_reduction <maximumf>, %99, %cst_39 [1] : vector<8x8xf32> to vector<8xf32>
    %101 = vector.shape_cast %100 : vector<8xf32> to vector<8x1xf32>
    %102 = vector.broadcast %101 : vector<8x1xf32> to vector<8x8xf32>
    %103 = arith.subf %99, %102 : vector<8x8xf32>
    %104 = math.exp %103 : vector<8x8xf32>
    %cst_40 = arith.constant dense<0.000000e+00> : vector<8xf32>
    %105 = vector.multi_reduction <add>, %104, %cst_40 [1] : vector<8x8xf32> to vector<8xf32>
    %106 = vector.shape_cast %105 : vector<8xf32> to vector<8x1xf32>
    %107 = tpu.reciprocal %106 {approx = true} : vector<8x1xf32> -> vector<8x1xf32>
    %108 = vector.broadcast %107 : vector<8x1xf32> to vector<8x8xf32>
    %109 = arith.mulf %104, %108 : vector<8x8xf32>
    %cst_41 = arith.constant dense<0.000000e+00> : vector<8x16xf32>
    %110 = tpu.matmul %109, %94, %cst_41 {dimension_numbers = #tpu.dot_dimension_numbers<[1], [0], [0], [1], [0, 0, 1, 1], [], []>} : vector<8x8xf32>, vector<8x16xf32>, vector<8x16xf32> -> vector<8x16xf32>
    %cst_42 = arith.constant dense<0.000000e+00> : vector<8x32xf32>
    %111 = tpu.matmul %110, %38, %cst_42 {dimension_numbers = #tpu.dot_dimension_numbers<[1], [0], [0], [1], [0, 0, 1, 1], [], []>} : vector<8x16xf32>, vector<16x32xf32>, vector<8x32xf32> -> vector<8x32xf32>
    %112 = vector.extract_strided_slice %89 {offsets = [0, 16], sizes = [8, 16], strides = [1, 1]} : vector<8x96xf32> to vector<8x16xf32>
    %113 = vector.extract_strided_slice %89 {offsets = [0, 48], sizes = [8, 16], strides = [1, 1]} : vector<8x96xf32> to vector<8x16xf32>
    %114 = vector.extract_strided_slice %89 {offsets = [0, 80], sizes = [8, 16], strides = [1, 1]} : vector<8x96xf32> to vector<8x16xf32>
    %cst_43 = arith.constant dense<0.000000e+00> : vector<8x8xf32>
    %115 = tpu.matmul %112, %113, %cst_43 {dimension_numbers = #tpu.dot_dimension_numbers<[1], [1], [0], [0], [0, 0, 1, 0], [], []>} : vector<8x16xf32>, vector<8x16xf32>, vector<8x8xf32> -> vector<8x8xf32>
    %cst_44 = arith.constant 2.500000e-01 : f32
    %116 = vector.broadcast %cst_44 : f32 to vector<8x8xf32>
    %117 = arith.mulf %115, %116 : vector<8x8xf32>
    %118 = vector.broadcast %91 : vector<1x8xf32> to vector<8x8xf32>
    %119 = arith.addf %117, %118 : vector<8x8xf32>
    %cst_45 = arith.constant dense<0xFF800000> : vector<8xf32>
    %120 = vector.multi_reduction <maximumf>, %119, %cst_45 [1] : vector<8x8xf32> to vector<8xf32>
    %121 = vector.shape_cast %120 : vector<8xf32> to vector<8x1xf32>
    %122 = vector.broadcast %121 : vector<8x1xf32> to vector<8x8xf32>
    %123 = arith.subf %119, %122 : vector<8x8xf32>
    %124 = math.exp %123 : vector<8x8xf32>
    %cst_46 = arith.constant dense<0.000000e+00> : vector<8xf32>
    %125 = vector.multi_reduction <add>, %124, %cst_46 [1] : vector<8x8xf32> to vector<8xf32>
    %126 = vector.shape_cast %125 : vector<8xf32> to vector<8x1xf32>
    %127 = tpu.reciprocal %126 {approx = true} : vector<8x1xf32> -> vector<8x1xf32>
    %128 = vector.broadcast %127 : vector<8x1xf32> to vector<8x8xf32>
    %129 = arith.mulf %124, %128 : vector<8x8xf32>
    %cst_47 = arith.constant dense<0.000000e+00> : vector<8x16xf32>
    %130 = tpu.matmul %129, %114, %cst_47 {dimension_numbers = #tpu.dot_dimension_numbers<[1], [0], [0], [1], [0, 0, 1, 1], [], []>} : vector<8x8xf32>, vector<8x16xf32>, vector<8x16xf32> -> vector<8x16xf32>
    %cst_48 = arith.constant dense<0.000000e+00> : vector<8x32xf32>
    %131 = tpu.matmul %130, %39, %cst_48 {dimension_numbers = #tpu.dot_dimension_numbers<[1], [0], [0], [1], [0, 0, 1, 1], [], []>} : vector<8x16xf32>, vector<16x32xf32>, vector<8x32xf32> -> vector<8x32xf32>
    %132 = arith.addf %111, %131 : vector<8x32xf32>
    %133 = tpu.concatenate %88, %132 in 0 : vector<8x32xf32>, vector<8x32xf32> -> vector<16x32xf32>
    %134 = vector.broadcast %30 : vector<1x32xf32> to vector<16x32xf32>
    %135 = arith.addf %133, %134 : vector<16x32xf32>
    %136 = arith.addf %135, %25 : vector<16x32xf32>
    %cst_49 = arith.constant dense<0.000000e+00> : vector<16xf32>
    %137 = vector.multi_reduction <add>, %136, %cst_49 [1] : vector<16x32xf32> to vector<16xf32>
    %138 = vector.shape_cast %137 : vector<16xf32> to vector<16x1xf32>
    %cst_50 = arith.constant 3.200000e+01 : f32
    %139 = vector.broadcast %cst_50 : f32 to vector<16x1xf32>
    %140 = arith.divf %138, %139 : vector<16x1xf32>
    %141 = vector.broadcast %140 : vector<16x1xf32> to vector<16x32xf32>
    %142 = arith.subf %136, %141 : vector<16x32xf32>
    %143 = arith.mulf %142, %142 : vector<16x32xf32>
    %cst_51 = arith.constant dense<0.000000e+00> : vector<16xf32>
    %144 = vector.multi_reduction <add>, %143, %cst_51 [1] : vector<16x32xf32> to vector<16xf32>
    %145 = vector.shape_cast %144 : vector<16xf32> to vector<16x1xf32>
    %cst_52 = arith.constant 3.200000e+01 : f32
    %146 = vector.broadcast %cst_52 : f32 to vector<16x1xf32>
    %147 = arith.divf %145, %146 : vector<16x1xf32>
    %148 = vector.broadcast %140 : vector<16x1xf32> to vector<16x32xf32>
    %149 = arith.subf %136, %148 : vector<16x32xf32>
    %cst_53 = arith.constant 9.99999996E-13 : f32
    %150 = vector.broadcast %cst_53 : f32 to vector<16x1xf32>
    %151 = arith.addf %147, %150 : vector<16x1xf32>
    %152 = math.rsqrt %151 : vector<16x1xf32>
    %153 = vector.broadcast %152 : vector<16x1xf32> to vector<16x32xf32>
    %154 = arith.mulf %149, %153 : vector<16x32xf32>
    %155 = vector.broadcast %31 : vector<1x32xf32> to vector<16x32xf32>
    %156 = arith.mulf %154, %155 : vector<16x32xf32>
    %157 = vector.broadcast %32 : vector<1x32xf32> to vector<16x32xf32>
    %158 = arith.addf %156, %157 : vector<16x32xf32>
    %c0_54 = arith.constant 0 : index
    %c0_55 = arith.constant 0 : index
    %c0_56 = arith.constant 0 : index
    %159 = vector.load %arg5[%c0_54, %c0_55, %c0_56] : memref<2x32x64xf32, #tpu.memory_space<vmem>>, vector<1x32x64xf32>
    %160 = vector.shape_cast %159 : vector<1x32x64xf32> to vector<32x64xf32>
    %cst_57 = arith.constant dense<0.000000e+00> : vector<16x64xf32>
    %161 = tpu.matmul %158, %160, %cst_57 {dimension_numbers = #tpu.dot_dimension_numbers<[1], [0], [0], [1], [0, 0, 1, 1], [], []>} : vector<16x32xf32>, vector<32x64xf32>, vector<16x64xf32> -> vector<16x64xf32>
    %162 = vector.broadcast %29 : vector<1x64xf32> to vector<16x64xf32>
    %163 = arith.addf %161, %162 : vector<16x64xf32>
    %cst_58 = arith.constant 5.000000e-01 : f32
    %164 = vector.broadcast %cst_58 : f32 to vector<16x64xf32>
    %165 = arith.mulf %164, %163 : vector<16x64xf32>
    %cst_59 = arith.constant 4.471500e-02 : f32
    %166 = vector.broadcast %cst_59 : f32 to vector<16x64xf32>
    %167 = arith.mulf %166, %163 : vector<16x64xf32>
    %168 = arith.mulf %167, %163 : vector<16x64xf32>
    %169 = arith.mulf %168, %163 : vector<16x64xf32>
    %170 = arith.addf %163, %169 : vector<16x64xf32>
    %cst_60 = arith.constant 0.797884583 : f32
    %171 = vector.broadcast %cst_60 : f32 to vector<16x64xf32>
    %172 = arith.mulf %171, %170 : vector<16x64xf32>
    %173 = math.tanh %172 : vector<16x64xf32>
    %cst_61 = arith.constant 1.000000e+00 : f32
    %174 = vector.broadcast %cst_61 : f32 to vector<16x64xf32>
    %175 = arith.addf %174, %173 : vector<16x64xf32>
    %176 = arith.mulf %165, %175 : vector<16x64xf32>
    %c0_62 = arith.constant 0 : index
    %c0_63 = arith.constant 0 : index
    %c0_64 = arith.constant 0 : index
    %177 = vector.load %arg6[%c0_62, %c0_63, %c0_64] : memref<2x64x32xf32, #tpu.memory_space<vmem>>, vector<1x64x32xf32>
    %178 = vector.shape_cast %177 : vector<1x64x32xf32> to vector<64x32xf32>
    %cst_65 = arith.constant dense<0.000000e+00> : vector<16x32xf32>
    %179 = tpu.matmul %176, %178, %cst_65 {dimension_numbers = #tpu.dot_dimension_numbers<[1], [0], [0], [1], [0, 0, 1, 1], [], []>} : vector<16x64xf32>, vector<64x32xf32>, vector<16x32xf32> -> vector<16x32xf32>
    %180 = vector.broadcast %33 : vector<1x32xf32> to vector<16x32xf32>
    %181 = arith.addf %179, %180 : vector<16x32xf32>
    %182 = arith.addf %181, %158 : vector<16x32xf32>
    %cst_66 = arith.constant dense<0.000000e+00> : vector<16xf32>
    %183 = vector.multi_reduction <add>, %182, %cst_66 [1] : vector<16x32xf32> to vector<16xf32>
    %184 = vector.shape_cast %183 : vector<16xf32> to vector<16x1xf32>
    %cst_67 = arith.constant 3.200000e+01 : f32
    %185 = vector.broadcast %cst_67 : f32 to vector<16x1xf32>
    %186 = arith.divf %184, %185 : vector<16x1xf32>
    %187 = vector.broadcast %186 : vector<16x1xf32> to vector<16x32xf32>
    %188 = arith.subf %182, %187 : vector<16x32xf32>
    %189 = arith.mulf %188, %188 : vector<16x32xf32>
    %cst_68 = arith.constant dense<0.000000e+00> : vector<16xf32>
    %190 = vector.multi_reduction <add>, %189, %cst_68 [1] : vector<16x32xf32> to vector<16xf32>
    %191 = vector.shape_cast %190 : vector<16xf32> to vector<16x1xf32>
    %cst_69 = arith.constant 3.200000e+01 : f32
    %192 = vector.broadcast %cst_69 : f32 to vector<16x1xf32>
    %193 = arith.divf %191, %192 : vector<16x1xf32>
    %194 = vector.broadcast %186 : vector<16x1xf32> to vector<16x32xf32>
    %195 = arith.subf %182, %194 : vector<16x32xf32>
    %cst_70 = arith.constant 9.99999996E-13 : f32
    %196 = vector.broadcast %cst_70 : f32 to vector<16x1xf32>
    %197 = arith.addf %193, %196 : vector<16x1xf32>
    %198 = math.rsqrt %197 : vector<16x1xf32>
    %199 = vector.broadcast %198 : vector<16x1xf32> to vector<16x32xf32>
    %200 = arith.mulf %195, %199 : vector<16x32xf32>
    %201 = vector.broadcast %34 : vector<1x32xf32> to vector<16x32xf32>
    %202 = arith.mulf %200, %201 : vector<16x32xf32>
    %203 = vector.broadcast %35 : vector<1x32xf32> to vector<16x32xf32>
    %204 = arith.addf %202, %203 : vector<16x32xf32>
    %c1_71 = arith.constant 1 : index
    %c0_72 = arith.constant 0 : index
    %c0_73 = arith.constant 0 : index
    %205 = vector.load %arg7[%c1_71, %c0_72, %c0_73] : memref<2x8x96xf32, #tpu.memory_space<vmem>>, vector<1x8x96xf32>
    %206 = vector.shape_cast %205 : vector<1x8x96xf32> to vector<8x96xf32>
    %207 = vector.extract_strided_slice %206 {offsets = [0, 0], sizes = [1, 96], strides = [1, 1]} : vector<8x96xf32> to vector<1x96xf32>
    %208 = vector.extract_strided_slice %206 {offsets = [1, 0], sizes = [1, 64], strides = [1, 1]} : vector<8x96xf32> to vector<1x64xf32>
    %209 = vector.extract_strided_slice %206 {offsets = [2, 0], sizes = [1, 32], strides = [1, 1]} : vector<8x96xf32> to vector<1x32xf32>
    %210 = vector.extract_strided_slice %206 {offsets = [3, 0], sizes = [1, 32], strides = [1, 1]} : vector<8x96xf32> to vector<1x32xf32>
    %211 = vector.extract_strided_slice %206 {offsets = [4, 0], sizes = [1, 32], strides = [1, 1]} : vector<8x96xf32> to vector<1x32xf32>
    %212 = vector.extract_strided_slice %206 {offsets = [5, 0], sizes = [1, 32], strides = [1, 1]} : vector<8x96xf32> to vector<1x32xf32>
    %213 = vector.extract_strided_slice %206 {offsets = [6, 0], sizes = [1, 32], strides = [1, 1]} : vector<8x96xf32> to vector<1x32xf32>
    %214 = vector.extract_strided_slice %206 {offsets = [7, 0], sizes = [1, 32], strides = [1, 1]} : vector<8x96xf32> to vector<1x32xf32>
    %c1_74 = arith.constant 1 : index
    %c0_75 = arith.constant 0 : index
    %c0_76 = arith.constant 0 : index
    %215 = vector.load %arg4[%c1_74, %c0_75, %c0_76] : memref<2x32x32xf32, #tpu.memory_space<vmem>>, vector<1x32x32xf32>
    %216 = vector.shape_cast %215 : vector<1x32x32xf32> to vector<32x32xf32>
    %217 = vector.extract_strided_slice %216 {offsets = [0, 0], sizes = [16, 32], strides = [1, 1]} : vector<32x32xf32> to vector<16x32xf32>
    %218 = vector.extract_strided_slice %216 {offsets = [16, 0], sizes = [16, 32], strides = [1, 1]} : vector<32x32xf32> to vector<16x32xf32>
    %c1_77 = arith.constant 1 : index
    %c0_78 = arith.constant 0 : index
    %c0_79 = arith.constant 0 : index
    %219 = vector.load %arg3[%c1_77, %c0_78, %c0_79] : memref<2x32x96xf32, #tpu.memory_space<vmem>>, vector<1x32x96xf32>
    %220 = vector.shape_cast %219 : vector<1x32x96xf32> to vector<32x96xf32>
    %cst_80 = arith.constant dense<0.000000e+00> : vector<16x96xf32>
    %221 = tpu.matmul %204, %220, %cst_80 {dimension_numbers = #tpu.dot_dimension_numbers<[1], [0], [0], [1], [0, 0, 1, 1], [], []>} : vector<16x32xf32>, vector<32x96xf32>, vector<16x96xf32> -> vector<16x96xf32>
    %222 = vector.broadcast %207 : vector<1x96xf32> to vector<16x96xf32>
    %223 = arith.addf %221, %222 : vector<16x96xf32>
    %224 = vector.extract_strided_slice %223 {offsets = [0, 0], sizes = [8, 96], strides = [1, 1]} : vector<16x96xf32> to vector<8x96xf32>
    %c0_81 = arith.constant 0 : index
    %c0_82 = arith.constant 0 : index
    %c0_83 = arith.constant 0 : index
    %225 = vector.load %arg2[%c0_81, %c0_82, %c0_83] : memref<2x1x8xf32, #tpu.memory_space<vmem>>, vector<1x1x8xf32>
    %226 = vector.shape_cast %225 : vector<1x1x8xf32> to vector<1x8xf32>
    %227 = vector.extract_strided_slice %224 {offsets = [0, 0], sizes = [8, 16], strides = [1, 1]} : vector<8x96xf32> to vector<8x16xf32>
    %228 = vector.extract_strided_slice %224 {offsets = [0, 32], sizes = [8, 16], strides = [1, 1]} : vector<8x96xf32> to vector<8x16xf32>
    %229 = vector.extract_strided_slice %224 {offsets = [0, 64], sizes = [8, 16], strides = [1, 1]} : vector<8x96xf32> to vector<8x16xf32>
    %cst_84 = arith.constant dense<0.000000e+00> : vector<8x8xf32>
    %230 = tpu.matmul %227, %228, %cst_84 {dimension_numbers = #tpu.dot_dimension_numbers<[1], [1], [0], [0], [0, 0, 1, 0], [], []>} : vector<8x16xf32>, vector<8x16xf32>, vector<8x8xf32> -> vector<8x8xf32>
    %cst_85 = arith.constant 2.500000e-01 : f32
    %231 = vector.broadcast %cst_85 : f32 to vector<8x8xf32>
    %232 = arith.mulf %230, %231 : vector<8x8xf32>
    %233 = vector.broadcast %226 : vector<1x8xf32> to vector<8x8xf32>
    %234 = arith.addf %232, %233 : vector<8x8xf32>
    %cst_86 = arith.constant dense<0xFF800000> : vector<8xf32>
    %235 = vector.multi_reduction <maximumf>, %234, %cst_86 [1] : vector<8x8xf32> to vector<8xf32>
    %236 = vector.shape_cast %235 : vector<8xf32> to vector<8x1xf32>
    %237 = vector.broadcast %236 : vector<8x1xf32> to vector<8x8xf32>
    %238 = arith.subf %234, %237 : vector<8x8xf32>
    %239 = math.exp %238 : vector<8x8xf32>
    %cst_87 = arith.constant dense<0.000000e+00> : vector<8xf32>
    %240 = vector.multi_reduction <add>, %239, %cst_87 [1] : vector<8x8xf32> to vector<8xf32>
    %241 = vector.shape_cast %240 : vector<8xf32> to vector<8x1xf32>
    %242 = tpu.reciprocal %241 {approx = true} : vector<8x1xf32> -> vector<8x1xf32>
    %243 = vector.broadcast %242 : vector<8x1xf32> to vector<8x8xf32>
    %244 = arith.mulf %239, %243 : vector<8x8xf32>
    %cst_88 = arith.constant dense<0.000000e+00> : vector<8x16xf32>
    %245 = tpu.matmul %244, %229, %cst_88 {dimension_numbers = #tpu.dot_dimension_numbers<[1], [0], [0], [1], [0, 0, 1, 1], [], []>} : vector<8x8xf32>, vector<8x16xf32>, vector<8x16xf32> -> vector<8x16xf32>
    %cst_89 = arith.constant dense<0.000000e+00> : vector<8x32xf32>
    %246 = tpu.matmul %245, %217, %cst_89 {dimension_numbers = #tpu.dot_dimension_numbers<[1], [0], [0], [1], [0, 0, 1, 1], [], []>} : vector<8x16xf32>, vector<16x32xf32>, vector<8x32xf32> -> vector<8x32xf32>
    %247 = vector.extract_strided_slice %224 {offsets = [0, 16], sizes = [8, 16], strides = [1, 1]} : vector<8x96xf32> to vector<8x16xf32>
    %248 = vector.extract_strided_slice %224 {offsets = [0, 48], sizes = [8, 16], strides = [1, 1]} : vector<8x96xf32> to vector<8x16xf32>
    %249 = vector.extract_strided_slice %224 {offsets = [0, 80], sizes = [8, 16], strides = [1, 1]} : vector<8x96xf32> to vector<8x16xf32>
    %cst_90 = arith.constant dense<0.000000e+00> : vector<8x8xf32>
    %250 = tpu.matmul %247, %248, %cst_90 {dimension_numbers = #tpu.dot_dimension_numbers<[1], [1], [0], [0], [0, 0, 1, 0], [], []>} : vector<8x16xf32>, vector<8x16xf32>, vector<8x8xf32> -> vector<8x8xf32>
    %cst_91 = arith.constant 2.500000e-01 : f32
    %251 = vector.broadcast %cst_91 : f32 to vector<8x8xf32>
    %252 = arith.mulf %250, %251 : vector<8x8xf32>
    %253 = vector.broadcast %226 : vector<1x8xf32> to vector<8x8xf32>
    %254 = arith.addf %252, %253 : vector<8x8xf32>
    %cst_92 = arith.constant dense<0xFF800000> : vector<8xf32>
    %255 = vector.multi_reduction <maximumf>, %254, %cst_92 [1] : vector<8x8xf32> to vector<8xf32>
    %256 = vector.shape_cast %255 : vector<8xf32> to vector<8x1xf32>
    %257 = vector.broadcast %256 : vector<8x1xf32> to vector<8x8xf32>
    %258 = arith.subf %254, %257 : vector<8x8xf32>
    %259 = math.exp %258 : vector<8x8xf32>
    %cst_93 = arith.constant dense<0.000000e+00> : vector<8xf32>
    %260 = vector.multi_reduction <add>, %259, %cst_93 [1] : vector<8x8xf32> to vector<8xf32>
    %261 = vector.shape_cast %260 : vector<8xf32> to vector<8x1xf32>
    %262 = tpu.reciprocal %261 {approx = true} : vector<8x1xf32> -> vector<8x1xf32>
    %263 = vector.broadcast %262 : vector<8x1xf32> to vector<8x8xf32>
    %264 = arith.mulf %259, %263 : vector<8x8xf32>
    %cst_94 = arith.constant dense<0.000000e+00> : vector<8x16xf32>
    %265 = tpu.matmul %264, %249, %cst_94 {dimension_numbers = #tpu.dot_dimension_numbers<[1], [0], [0], [1], [0, 0, 1, 1], [], []>} : vector<8x8xf32>, vector<8x16xf32>, vector<8x16xf32> -> vector<8x16xf32>
    %cst_95 = arith.constant dense<0.000000e+00> : vector<8x32xf32>
    %266 = tpu.matmul %265, %218, %cst_95 {dimension_numbers = #tpu.dot_dimension_numbers<[1], [0], [0], [1], [0, 0, 1, 1], [], []>} : vector<8x16xf32>, vector<16x32xf32>, vector<8x32xf32> -> vector<8x32xf32>
    %267 = arith.addf %246, %266 : vector<8x32xf32>
    %268 = vector.extract_strided_slice %223 {offsets = [8, 0], sizes = [8, 96], strides = [1, 1]} : vector<16x96xf32> to vector<8x96xf32>
    %c1_96 = arith.constant 1 : index
    %c0_97 = arith.constant 0 : index
    %c0_98 = arith.constant 0 : index
    %269 = vector.load %arg2[%c1_96, %c0_97, %c0_98] : memref<2x1x8xf32, #tpu.memory_space<vmem>>, vector<1x1x8xf32>
    %270 = vector.shape_cast %269 : vector<1x1x8xf32> to vector<1x8xf32>
    %271 = vector.extract_strided_slice %268 {offsets = [0, 0], sizes = [8, 16], strides = [1, 1]} : vector<8x96xf32> to vector<8x16xf32>
    %272 = vector.extract_strided_slice %268 {offsets = [0, 32], sizes = [8, 16], strides = [1, 1]} : vector<8x96xf32> to vector<8x16xf32>
    %273 = vector.extract_strided_slice %268 {offsets = [0, 64], sizes = [8, 16], strides = [1, 1]} : vector<8x96xf32> to vector<8x16xf32>
    %cst_99 = arith.constant dense<0.000000e+00> : vector<8x8xf32>
    %274 = tpu.matmul %271, %272, %cst_99 {dimension_numbers = #tpu.dot_dimension_numbers<[1], [1], [0], [0], [0, 0, 1, 0], [], []>} : vector<8x16xf32>, vector<8x16xf32>, vector<8x8xf32> -> vector<8x8xf32>
    %cst_100 = arith.constant 2.500000e-01 : f32
    %275 = vector.broadcast %cst_100 : f32 to vector<8x8xf32>
    %276 = arith.mulf %274, %275 : vector<8x8xf32>
    %277 = vector.broadcast %270 : vector<1x8xf32> to vector<8x8xf32>
    %278 = arith.addf %276, %277 : vector<8x8xf32>
    %cst_101 = arith.constant dense<0xFF800000> : vector<8xf32>
    %279 = vector.multi_reduction <maximumf>, %278, %cst_101 [1] : vector<8x8xf32> to vector<8xf32>
    %280 = vector.shape_cast %279 : vector<8xf32> to vector<8x1xf32>
    %281 = vector.broadcast %280 : vector<8x1xf32> to vector<8x8xf32>
    %282 = arith.subf %278, %281 : vector<8x8xf32>
    %283 = math.exp %282 : vector<8x8xf32>
    %cst_102 = arith.constant dense<0.000000e+00> : vector<8xf32>
    %284 = vector.multi_reduction <add>, %283, %cst_102 [1] : vector<8x8xf32> to vector<8xf32>
    %285 = vector.shape_cast %284 : vector<8xf32> to vector<8x1xf32>
    %286 = tpu.reciprocal %285 {approx = true} : vector<8x1xf32> -> vector<8x1xf32>
    %287 = vector.broadcast %286 : vector<8x1xf32> to vector<8x8xf32>
    %288 = arith.mulf %283, %287 : vector<8x8xf32>
    %cst_103 = arith.constant dense<0.000000e+00> : vector<8x16xf32>
    %289 = tpu.matmul %288, %273, %cst_103 {dimension_numbers = #tpu.dot_dimension_numbers<[1], [0], [0], [1], [0, 0, 1, 1], [], []>} : vector<8x8xf32>, vector<8x16xf32>, vector<8x16xf32> -> vector<8x16xf32>
    %cst_104 = arith.constant dense<0.000000e+00> : vector<8x32xf32>
    %290 = tpu.matmul %289, %217, %cst_104 {dimension_numbers = #tpu.dot_dimension_numbers<[1], [0], [0], [1], [0, 0, 1, 1], [], []>} : vector<8x16xf32>, vector<16x32xf32>, vector<8x32xf32> -> vector<8x32xf32>
    %291 = vector.extract_strided_slice %268 {offsets = [0, 16], sizes = [8, 16], strides = [1, 1]} : vector<8x96xf32> to vector<8x16xf32>
    %292 = vector.extract_strided_slice %268 {offsets = [0, 48], sizes = [8, 16], strides = [1, 1]} : vector<8x96xf32> to vector<8x16xf32>
    %293 = vector.extract_strided_slice %268 {offsets = [0, 80], sizes = [8, 16], strides = [1, 1]} : vector<8x96xf32> to vector<8x16xf32>
    %cst_105 = arith.constant dense<0.000000e+00> : vector<8x8xf32>
    %294 = tpu.matmul %291, %292, %cst_105 {dimension_numbers = #tpu.dot_dimension_numbers<[1], [1], [0], [0], [0, 0, 1, 0], [], []>} : vector<8x16xf32>, vector<8x16xf32>, vector<8x8xf32> -> vector<8x8xf32>
    %cst_106 = arith.constant 2.500000e-01 : f32
    %295 = vector.broadcast %cst_106 : f32 to vector<8x8xf32>
    %296 = arith.mulf %294, %295 : vector<8x8xf32>
    %297 = vector.broadcast %270 : vector<1x8xf32> to vector<8x8xf32>
    %298 = arith.addf %296, %297 : vector<8x8xf32>
    %cst_107 = arith.constant dense<0xFF800000> : vector<8xf32>
    %299 = vector.multi_reduction <maximumf>, %298, %cst_107 [1] : vector<8x8xf32> to vector<8xf32>
    %300 = vector.shape_cast %299 : vector<8xf32> to vector<8x1xf32>
    %301 = vector.broadcast %300 : vector<8x1xf32> to vector<8x8xf32>
    %302 = arith.subf %298, %301 : vector<8x8xf32>
    %303 = math.exp %302 : vector<8x8xf32>
    %cst_108 = arith.constant dense<0.000000e+00> : vector<8xf32>
    %304 = vector.multi_reduction <add>, %303, %cst_108 [1] : vector<8x8xf32> to vector<8xf32>
    %305 = vector.shape_cast %304 : vector<8xf32> to vector<8x1xf32>
    %306 = tpu.reciprocal %305 {approx = true} : vector<8x1xf32> -> vector<8x1xf32>
    %307 = vector.broadcast %306 : vector<8x1xf32> to vector<8x8xf32>
    %308 = arith.mulf %303, %307 : vector<8x8xf32>
    %cst_109 = arith.constant dense<0.000000e+00> : vector<8x16xf32>
    %309 = tpu.matmul %308, %293, %cst_109 {dimension_numbers = #tpu.dot_dimension_numbers<[1], [0], [0], [1], [0, 0, 1, 1], [], []>} : vector<8x8xf32>, vector<8x16xf32>, vector<8x16xf32> -> vector<8x16xf32>
    %cst_110 = arith.constant dense<0.000000e+00> : vector<8x32xf32>
    %310 = tpu.matmul %309, %218, %cst_110 {dimension_numbers = #tpu.dot_dimension_numbers<[1], [0], [0], [1], [0, 0, 1, 1], [], []>} : vector<8x16xf32>, vector<16x32xf32>, vector<8x32xf32> -> vector<8x32xf32>
    %311 = arith.addf %290, %310 : vector<8x32xf32>
    %312 = tpu.concatenate %267, %311 in 0 : vector<8x32xf32>, vector<8x32xf32> -> vector<16x32xf32>
    %313 = vector.broadcast %209 : vector<1x32xf32> to vector<16x32xf32>
    %314 = arith.addf %312, %313 : vector<16x32xf32>
    %315 = arith.addf %314, %204 : vector<16x32xf32>
    %cst_111 = arith.constant dense<0.000000e+00> : vector<16xf32>
    %316 = vector.multi_reduction <add>, %315, %cst_111 [1] : vector<16x32xf32> to vector<16xf32>
    %317 = vector.shape_cast %316 : vector<16xf32> to vector<16x1xf32>
    %cst_112 = arith.constant 3.200000e+01 : f32
    %318 = vector.broadcast %cst_112 : f32 to vector<16x1xf32>
    %319 = arith.divf %317, %318 : vector<16x1xf32>
    %320 = vector.broadcast %319 : vector<16x1xf32> to vector<16x32xf32>
    %321 = arith.subf %315, %320 : vector<16x32xf32>
    %322 = arith.mulf %321, %321 : vector<16x32xf32>
    %cst_113 = arith.constant dense<0.000000e+00> : vector<16xf32>
    %323 = vector.multi_reduction <add>, %322, %cst_113 [1] : vector<16x32xf32> to vector<16xf32>
    %324 = vector.shape_cast %323 : vector<16xf32> to vector<16x1xf32>
    %cst_114 = arith.constant 3.200000e+01 : f32
    %325 = vector.broadcast %cst_114 : f32 to vector<16x1xf32>
    %326 = arith.divf %324, %325 : vector<16x1xf32>
    %327 = vector.broadcast %319 : vector<16x1xf32> to vector<16x32xf32>
    %328 = arith.subf %315, %327 : vector<16x32xf32>
    %cst_115 = arith.constant 9.99999996E-13 : f32
    %329 = vector.broadcast %cst_115 : f32 to vector<16x1xf32>
    %330 = arith.addf %326, %329 : vector<16x1xf32>
    %331 = math.rsqrt %330 : vector<16x1xf32>
    %332 = vector.broadcast %331 : vector<16x1xf32> to vector<16x32xf32>
    %333 = arith.mulf %328, %332 : vector<16x32xf32>
    %334 = vector.broadcast %210 : vector<1x32xf32> to vector<16x32xf32>
    %335 = arith.mulf %333, %334 : vector<16x32xf32>
    %336 = vector.broadcast %211 : vector<1x32xf32> to vector<16x32xf32>
    %337 = arith.addf %335, %336 : vector<16x32xf32>
    %c1_116 = arith.constant 1 : index
    %c0_117 = arith.constant 0 : index
    %c0_118 = arith.constant 0 : index
    %338 = vector.load %arg5[%c1_116, %c0_117, %c0_118] : memref<2x32x64xf32, #tpu.memory_space<vmem>>, vector<1x32x64xf32>
    %339 = vector.shape_cast %338 : vector<1x32x64xf32> to vector<32x64xf32>
    %cst_119 = arith.constant dense<0.000000e+00> : vector<16x64xf32>
    %340 = tpu.matmul %337, %339, %cst_119 {dimension_numbers = #tpu.dot_dimension_numbers<[1], [0], [0], [1], [0, 0, 1, 1], [], []>} : vector<16x32xf32>, vector<32x64xf32>, vector<16x64xf32> -> vector<16x64xf32>
    %341 = vector.broadcast %208 : vector<1x64xf32> to vector<16x64xf32>
    %342 = arith.addf %340, %341 : vector<16x64xf32>
    %cst_120 = arith.constant 5.000000e-01 : f32
    %343 = vector.broadcast %cst_120 : f32 to vector<16x64xf32>
    %344 = arith.mulf %343, %342 : vector<16x64xf32>
    %cst_121 = arith.constant 4.471500e-02 : f32
    %345 = vector.broadcast %cst_121 : f32 to vector<16x64xf32>
    %346 = arith.mulf %345, %342 : vector<16x64xf32>
    %347 = arith.mulf %346, %342 : vector<16x64xf32>
    %348 = arith.mulf %347, %342 : vector<16x64xf32>
    %349 = arith.addf %342, %348 : vector<16x64xf32>
    %cst_122 = arith.constant 0.797884583 : f32
    %350 = vector.broadcast %cst_122 : f32 to vector<16x64xf32>
    %351 = arith.mulf %350, %349 : vector<16x64xf32>
    %352 = math.tanh %351 : vector<16x64xf32>
    %cst_123 = arith.constant 1.000000e+00 : f32
    %353 = vector.broadcast %cst_123 : f32 to vector<16x64xf32>
    %354 = arith.addf %353, %352 : vector<16x64xf32>
    %355 = arith.mulf %344, %354 : vector<16x64xf32>
    %c1_124 = arith.constant 1 : index
    %c0_125 = arith.constant 0 : index
    %c0_126 = arith.constant 0 : index
    %356 = vector.load %arg6[%c1_124, %c0_125, %c0_126] : memref<2x64x32xf32, #tpu.memory_space<vmem>>, vector<1x64x32xf32>
    %357 = vector.shape_cast %356 : vector<1x64x32xf32> to vector<64x32xf32>
    %cst_127 = arith.constant dense<0.000000e+00> : vector<16x32xf32>
    %358 = tpu.matmul %355, %357, %cst_127 {dimension_numbers = #tpu.dot_dimension_numbers<[1], [0], [0], [1], [0, 0, 1, 1], [], []>} : vector<16x64xf32>, vector<64x32xf32>, vector<16x32xf32> -> vector<16x32xf32>
    %359 = vector.broadcast %212 : vector<1x32xf32> to vector<16x32xf32>
    %360 = arith.addf %358, %359 : vector<16x32xf32>
    %361 = arith.addf %360, %337 : vector<16x32xf32>
    %cst_128 = arith.constant dense<0.000000e+00> : vector<16xf32>
    %362 = vector.multi_reduction <add>, %361, %cst_128 [1] : vector<16x32xf32> to vector<16xf32>
    %363 = vector.shape_cast %362 : vector<16xf32> to vector<16x1xf32>
    %cst_129 = arith.constant 3.200000e+01 : f32
    %364 = vector.broadcast %cst_129 : f32 to vector<16x1xf32>
    %365 = arith.divf %363, %364 : vector<16x1xf32>
    %366 = vector.broadcast %365 : vector<16x1xf32> to vector<16x32xf32>
    %367 = arith.subf %361, %366 : vector<16x32xf32>
    %368 = arith.mulf %367, %367 : vector<16x32xf32>
    %cst_130 = arith.constant dense<0.000000e+00> : vector<16xf32>
    %369 = vector.multi_reduction <add>, %368, %cst_130 [1] : vector<16x32xf32> to vector<16xf32>
    %370 = vector.shape_cast %369 : vector<16xf32> to vector<16x1xf32>
    %cst_131 = arith.constant 3.200000e+01 : f32
    %371 = vector.broadcast %cst_131 : f32 to vector<16x1xf32>
    %372 = arith.divf %370, %371 : vector<16x1xf32>
    %373 = vector.broadcast %365 : vector<16x1xf32> to vector<16x32xf32>
    %374 = arith.subf %361, %373 : vector<16x32xf32>
    %cst_132 = arith.constant 9.99999996E-13 : f32
    %375 = vector.broadcast %cst_132 : f32 to vector<16x1xf32>
    %376 = arith.addf %372, %375 : vector<16x1xf32>
    %377 = math.rsqrt %376 : vector<16x1xf32>
    %378 = vector.broadcast %377 : vector<16x1xf32> to vector<16x32xf32>
    %379 = arith.mulf %374, %378 : vector<16x32xf32>
    %380 = vector.broadcast %213 : vector<1x32xf32> to vector<16x32xf32>
    %381 = arith.mulf %379, %380 : vector<16x32xf32>
    %382 = vector.broadcast %214 : vector<1x32xf32> to vector<16x32xf32>
    %383 = arith.addf %381, %382 : vector<16x32xf32>
    %384 = vector.extract_strided_slice %383 {offsets = [0, 0], sizes = [1, 32], strides = [1, 1]} : vector<16x32xf32> to vector<1x32xf32>
    %c0_133 = arith.constant 0 : index
    %c0_134 = arith.constant 0 : index
    %c0_135 = arith.constant 0 : index
    %385 = vector.load %arg9[%c0_133, %c0_134, %c0_135] : memref<2x1x32xf32, #tpu.memory_space<vmem>>, vector<1x1x32xf32>
    %386 = vector.shape_cast %385 : vector<1x1x32xf32> to vector<1x32xf32>
    %387 = vector.shape_cast %384 : vector<1x32xf32> to vector<1x1x32xf32>
    tpu.vector_store %arg9[%c0_133, %c0_134, %c0_135], %387 {strides = array<i32>} : memref<2x1x32xf32, #tpu.memory_space<vmem>>, vector<1x1x32xf32>,
    %388 = vector.extract_strided_slice %383 {offsets = [8, 0], sizes = [1, 32], strides = [1, 1]} : vector<16x32xf32> to vector<1x32xf32>
    %c1_136 = arith.constant 1 : index
    %c0_137 = arith.constant 0 : index
    %c0_138 = arith.constant 0 : index
    %389 = vector.load %arg9[%c1_136, %c0_137, %c0_138] : memref<2x1x32xf32, #tpu.memory_space<vmem>>, vector<1x1x32xf32>
    %390 = vector.shape_cast %389 : vector<1x1x32xf32> to vector<1x32xf32>
    %391 = vector.shape_cast %388 : vector<1x32xf32> to vector<1x1x32xf32>
    tpu.vector_store %arg9[%c1_136, %c0_137, %c0_138], %391 {strides = array<i32>} : memref<2x1x32xf32, #tpu.memory_space<vmem>>, vector<1x1x32xf32>,
    return
  }
  func.func @transform_0(%arg0: i32) -> (i32, i32, i32) {
    %c0_i32 = arith.constant 0 : i32
    %c0_i32_0 = arith.constant 0 : i32
    %c0_i32_1 = arith.constant 0 : i32
    return %arg0, %c0_i32, %c0_i32_0 : i32, i32, i32
  }
  func.func @transform_1(%arg0: i32) -> (i32, i32, i32) {
    %c0_i32 = arith.constant 0 : i32
    %c0_i32_0 = arith.constant 0 : i32
    %c0_i32_1 = arith.constant 0 : i32
    return %arg0, %c0_i32, %c0_i32_0 : i32, i32, i32
  }
  func.func @transform_2(%arg0: i32) -> (i32, i32, i32) {
    %c0_i32 = arith.constant 0 : i32
    %c0_i32_0 = arith.constant 0 : i32
    %c0_i32_1 = arith.constant 0 : i32
    %c0_i32_2 = arith.constant 0 : i32
    return %c0_i32, %c0_i32_0, %c0_i32_1 : i32, i32, i32
  }
  func.func @transform_3(%arg0: i32) -> (i32, i32, i32) {
    %c0_i32 = arith.constant 0 : i32
    %c0_i32_0 = arith.constant 0 : i32
    %c0_i32_1 = arith.constant 0 : i32
    %c0_i32_2 = arith.constant 0 : i32
    return %c0_i32, %c0_i32_0, %c0_i32_1 : i32, i32, i32
  }
  func.func @transform_4(%arg0: i32) -> (i32, i32, i32) {
    %c0_i32 = arith.constant 0 : i32
    %c0_i32_0 = arith.constant 0 : i32
    %c0_i32_1 = arith.constant 0 : i32
    %c0_i32_2 = arith.constant 0 : i32
    return %c0_i32, %c0_i32_0, %c0_i32_1 : i32, i32, i32
  }
  func.func @transform_5(%arg0: i32) -> (i32, i32, i32) {
    %c0_i32 = arith.constant 0 : i32
    %c0_i32_0 = arith.constant 0 : i32
    %c0_i32_1 = arith.constant 0 : i32
    %c0_i32_2 = arith.constant 0 : i32
    return %c0_i32, %c0_i32_0, %c0_i32_1 : i32, i32, i32
  }
  func.func @transform_6(%arg0: i32) -> (i32, i32, i32) {
    %c0_i32 = arith.constant 0 : i32
    %c0_i32_0 = arith.constant 0 : i32
    %c0_i32_1 = arith.constant 0 : i32
    %c0_i32_2 = arith.constant 0 : i32
    return %c0_i32, %c0_i32_0, %c0_i32_1 : i32, i32, i32
  }
  func.func @transform_7(%arg0: i32) -> (i32, i32) {
    %c0_i32 = arith.constant 0 : i32
    %c0_i32_0 = arith.constant 0 : i32
    %c0_i32_1 = arith.constant 0 : i32
    return %c0_i32, %c0_i32_0 : i32, i32
  }
  func.func @transform_8(%arg0: i32) -> (i32, i32, i32) {
    %c0_i32 = arith.constant 0 : i32
    %c0_i32_0 = arith.constant 0 : i32
    %c0_i32_1 = arith.constant 0 : i32
    return %arg0, %c0_i32, %c0_i32_0 : i32, i32, i32
  }
}

</mosaic_0001>

<bundles_post_ra>
// kernel: text_encoder_forward.1
= control target key start
LH: loop header
LB: loop body
LE: loop exit
PB: predicated region body
PF: predicated region fallthrough
CT: control target
= control target key end

     0   :  { %vm34_vm0 = vcmask 261120   ;;  %s1927_s0 = inlined_call_operand.vmem [shape: f32[2,8,32], index: 0, kind: input, shape index: {}]   ;;  %s1928_s1 = inlined_call_operand.vmem [shape: f32[2,1,8], index: 1, kind: input, shape index: {}]   ;;  %s1929_s2 = inlined_call_operand.vmem [shape: f32[2,32,96], index: 2, kind: input, shape index: {}]   ;;  %s1930_s3 = inlined_call_operand.vmem [shape: f32[2,32,32], index: 3, kind: input, shape index: {}]   ;;  %s1931_s4 = inlined_call_operand.vmem [shape: f32[2,32,64], index: 4, kind: input, shape index: {}]   ;;  %s1932_s5 = inlined_call_operand.vmem [shape: f32[2,64,32], index: 5, kind: input, shape index: {}]   ;;  %s1933_s6 = inlined_call_operand.vmem [shape: f32[2,8,96], index: 6, kind: input, shape index: {}]   ;;  %s1934_s7 = inlined_call_operand.vmem [shape: f32[2,32], index: 7, kind: input, shape index: {}]   ;;  %s1935_s8 = inlined_call_operand.hbm [shape: f32[2,1,32], index: 8, kind: output, shape index: {}]  }
   0x1   :  { %v30_v0 = vld [vmem:[%s1927_s0] sm:$0xff] }
   0x2   :  { %v35_v1 = vsel %vm34_vm0, %v30_v0, 0.0 }
   0x3   :  { %36 = vadd.xlane.f32.xlu0 %v35_v1 }
   0x4   :  { %13 = vsyncpa [#allocation3], 0  ;;  %v1486_v2 = vmov 32.0   ;;  %v100_v14 = vld [vmem:[%s1929_s2 + $0x18] sm:$0xff]  ;;  %v99_v15 = vld [vmem:[%s1929_s2 + $0x10] sm:$0xff]  ;;  %s1488_s21 = smov 96  }
   0x5   :  { %1398 = vrcp.f32 %v1486_v2  ;;  %120 = vmatpush.msra.mxu0 %v100_v14  ;;  %v98_v16 = vld [vmem:[%s1929_s2 + $0x8] sm:$0xff]  ;;  %v97_v17 = vld [vmem:[%s1929_s2] sm:$0xff]  ;;  %s1489_s22 = smov 80   ;;  %s1490_s25 = smov 48   ;;  %vm135_vm5 = vcmask 130048   ;;  %vm165_vm6 = vcmask 64512  }
   0x6   :  { %v1564_v27 = vld [vmem:[%s1934_s7] ss:$0 sm:$0xff]  ;;  %v1395_v30 = vld [vmem:[%s1934_s7 + $0x1] ss:$0 sm:$0xff]  ;;  %s1487_s7 = smov 112   ;;  %v31_v37 = vld [vmem:[%s1927_s0 + $0x8] sm:$0xff] }
   0x7   :  { %121 = vmatpush.msra.mxu0 %v99_v15  ;;  %v1577_v33 = vld [vmem:[%s1933_s6] sm:$0xff]  ;;  %v38_v38 = vsel %vm34_vm0, %v31_v37, 0.0  ;;  %s1491_s27 = smov 64   ;;  %s1307_s11 = sshll.u32 %s1935_s8, 4  ;;  %s1308_s11 = int_to_ptr.hbm [resolvable:$true] %s1307_s11 }
   0x8   :  { %v101_v34 = vperm.slane %v1577_v33, 0  ;;  %v1606_v47 = vld [vmem:[%s1928_s1] ss:$0 sm:$0xff]  ;;  %s1493_s12 = smov 16  }
   0x9   :  { %122 = vmatpush.msra.mxu0 %v98_v16 }
   0xb   :  { %v1399_v3 = vpop.eup %1398  ;;  %123 = vmatpush.msra.mxu0 %v97_v17 }
   0xc   :  { %v42_v4 = vmul.f32 32.0, %v1399_v3  ;;  %vm46_vm1 = vweird.f32 %v1399_v3 }
   0xe   :  { %v43_v5 = vsub.f32 1.0, %v42_v4 }
  0x10   :  { %v44_v6 = vmul.f32 %v1399_v3, %v43_v5 }
  0x12   :  { %v45_v7 = vadd.f32 %v1399_v3, %v44_v6 }
  0x14   :  { %v1544_v8 = vsel %vm46_vm1, %v1399_v3, %v45_v7  ;;  %vm616_vm1 = vcmask 523264  }
  0x76   :  { %v37_v9 = vpop.xlane.xlu0 %36 }
  0x77   :  { %v48_v10 = vmul.f32 %v1544_v8, %v37_v9 }
  0x79   :  { %v50_v11 = vsub.f32 %v30_v0, %v48_v10 }
  0x7b   :  { %v52_v12 = vmul.f32 %v50_v11, %v50_v11 }
  0x7d   :  { %v54_v13 = vsel %vm34_vm0, %v52_v12, 0.0 }
  0x7e   :  { %55 = vadd.xlane.f32.xlu0 %v54_v13 }
  0xf1   :  { %v56_v18 = vpop.xlane.xlu0 %55 }
  0xf2   :  { %v60_v19 = vmul.f32 %v56_v18, %v1544_v8  ;;  %v1635_v18 = vld [vmem:[%s1930_s3 + $0x8] sm:$0xff] }
  0xf4   :  { %v62_v20 = vadd.f32 1e-12, %v60_v19  ;;  %v1640_v19 = vld [vmem:[%s1930_s3] sm:$0xff] }
  0xf6   :  { %1400 = vrsqrt.f32 %v62_v20  ;;  %vm70_vm3 = vweird.f32 %v62_v20 }
  0xfc   :  { %v1401_v21 = vpop.eup %1400 }
  0xfd   :  { %v65_v22 = vmul.f32 %v1401_v21, %v62_v20  ;;  %vm71_vm2 = vweird.f32 %v1401_v21 }
  0xfe   :  { %vm72_vm4 = vmor %vm70_vm3, %vm71_vm2 }
  0xff   :  { %v66_v23 = vmul.f32 %v1401_v21, %v65_v22 }
 0x101   :  { %v67_v24 = vmul.f32 0.5, %v66_v23 }
 0x103   :  { %v68_v25 = vsub.f32 1.5, %v67_v24 }
 0x105   :  { %v69_v26 = vmul.f32 %v1401_v21, %v68_v25  ;;  %v96_v25 = vld [vmem:[%s1930_s3 + $0x18] sm:$0xff] }
 0x107   :  { %v73_v28 = vsel %vm72_vm4, %v1401_v21, %v69_v26 }
 0x108   :  { %v84_v29 = vmul.f32 %v73_v28, %v50_v11 }
 0x10a   :  { %v87_v31 = vmul.f32 %v1564_v27, %v84_v29 }
 0x10c   :  { %v1570_v32 = vadd.f32 %v1395_v30, %v87_v31 }
 0x10e   :  { %1319 = vmatmul.msk.f32.vlgmr.msra.gmra.mxu0 %vm34_vm0, %v1570_v32 }
 0x18b   :  { %v125_v35 = vpop.f32.mrf.mxu0 }
 0x18c   :  { %v1582_v36 = vadd.f32 %v125_v35, %v101_v34 }
 0x18e   :  { %203 = vrot.lane.b32.xlu2 %v1582_v36, %s1487_s7  ;;  %133 = vrot.lane.b32.xlu1 %v1582_v36, %s1488_s21 }
 0x196   :  { %205 = vrot.lane.b32.xlu1 %v1582_v36, %s1489_s22 }
 0x1b7   :  { %39 = vadd.xlane.f32.xlu2 %v38_v38  ;;  %v1662_v38 = vld [vmem:[%s1928_s1 + $0x1] ss:$0 sm:$0xff] }
 0x1cf   :  { %244 = vrot.lane.b32.xlu2 %v1582_v36, %s1490_s25 }
 0x1e8   :  { %v204_v41 = vpop.permute.xlu2 %203 }
 0x200   :  { %v134_v39 = vpop.permute.xlu1 %133 }
 0x201   :  { %1321 = vmatpush.xpose.msk.msra.mxu1 %vm135_vm5, %v134_v39 }
 0x204   :  { %1322 = vmatmul.msk.f32.vlgmr.msra.gmra.mxu1 %vm135_vm5, %v1582_v36 }
 0x208   :  { %v206_v40 = vpop.permute.xlu1 %205 }
 0x209   :  { %1324 = vmatpush.xpose.msk.msra.mxu3 %vm135_vm5, %v206_v40 }
 0x20c   :  { %1325 = vmatmul.msk.f32.vlgmr.msra.gmra.mxu3 %vm135_vm5, %v204_v41 }
 0x20d   :  { %310 = vmatpush.msrb.mxu3 %v1635_v18 }
 0x20f   :  { %311 = vmatpush.msrb.mxu3 %v1640_v19 }
 0x22a   :  { %v40_v42 = vpop.xlane.xlu2 %39 }
 0x22b   :  { %v49_v43 = vmul.f32 %v1544_v8, %v40_v42 }
 0x22d   :  { %v51_v44 = vsub.f32 %v31_v37, %v49_v43 }
 0x22f   :  { %v53_v45 = vmul.f32 %v51_v44, %v51_v44 }
 0x231   :  { %v57_v46 = vsel %vm34_vm0, %v53_v45, 0.0 }
 0x232   :  { %58 = vadd.xlane.f32.xlu1 %v57_v46  ;;  %v245_v26 = vpop.permute.xlu2 %244 }
 0x281   :  { %v157_v48 = vpop.f32.mrf.mxu1 }
 0x282   :  { %v160_v49 = vmul.f32 0.25, %v157_v48 }
 0x284   :  { %v164_v50 = vadd.f32 %v1606_v47, %v160_v49 }
 0x286   :  { %v166_v51 = vsel %vm165_vm6, %v164_v50, -inf }
 0x287   :  { %167 = vmax.xlane.f32.xlu0 %v166_v51 }
 0x28f   :  { %v228_v52 = vpop.f32.mrf.mxu3 }
 0x290   :  { %v231_v53 = vmul.f32 0.25, %v228_v52 }
 0x292   :  { %v232_v54 = vadd.f32 %v1606_v47, %v231_v53 }
 0x294   :  { %v233_v55 = vsel %vm165_vm6, %v232_v54, -inf }
 0x295   :  { %234 = vmax.xlane.f32.xlu0 %v233_v55 }
 0x2a5   :  { %v59_v56 = vpop.xlane.xlu1 %58 }
 0x2a6   :  { %v61_v57 = vmul.f32 %v59_v56, %v1544_v8 }
 0x2a8   :  { %v63_v58 = vadd.f32 1e-12, %v61_v57 }
 0x2aa   :  { %1402 = vrsqrt.f32 %v63_v58  ;;  %vm80_vm7 = vweird.f32 %v63_v58 }
 0x2b0   :  { %v1403_v59 = vpop.eup %1402 }
 0x2b1   :  { %v75_v60 = vmul.f32 %v1403_v59, %v63_v58  ;;  %vm81_vm8 = vweird.f32 %v1403_v59  ;;  %v500_v58 = vperm.slane %v1577_v33, 2 }
 0x2b2   :  { %vm82_vm9 = vmor %vm80_vm7, %vm81_vm8 }
 0x2b3   :  { %v76_v61 = vmul.f32 %v1403_v59, %v75_v60 }
 0x2b5   :  { %v77_v62 = vmul.f32 0.5, %v76_v61 }
 0x2b7   :  { %v78_v63 = vsub.f32 1.5, %v77_v62 }
 0x2b9   :  { %v79_v0 = vmul.f32 %v1403_v59, %v78_v63 }
 0x2bb   :  { %v83_v1 = vsel %vm82_vm9, %v1403_v59, %v79_v0 }
 0x2bc   :  { %v85_v2 = vmul.f32 %v83_v1, %v51_v44 }
 0x2be   :  { %v88_v3 = vmul.f32 %v1564_v27, %v85_v2  ;;  %v95_v27 = vld [vmem:[%s1930_s3 + $0x10] sm:$0xff] }
 0x2c0   :  { %v1614_v4 = vadd.f32 %v1395_v30, %v88_v3 }
 0x2c2   :  { %1320 = vmatmul.msk.f32.gmra.mxu0 %vm34_vm0, %v1614_v4 }
 0x2fa   :  { %v168_v5 = vpop.xlane.xlu0 %167 }
 0x2fb   :  { %v169_v6 = vsub.f32 %v164_v50, %v168_v5 }
 0x2fd   :  { %v170_v7 = vmul.f32 1.442695, %v169_v6 }
 0x2ff   :  { %1404 = vpow2.f32 %v170_v7 }
 0x305   :  { %v1405_v9 = vpop.eup %1404 }
 0x306   :  { %v172_v10 = vsel %vm165_vm6, %v1405_v9, 0.0 }
 0x307   :  { %173 = vadd.xlane.f32.xlu0 %v172_v10 }
 0x308   :  { %v235_v11 = vpop.xlane.xlu0 %234 }
 0x309   :  { %v236_v12 = vsub.f32 %v232_v54, %v235_v11 }
 0x30b   :  { %v237_v13 = vmul.f32 1.442695, %v236_v12 }
 0x30d   :  { %1406 = vpow2.f32 %v237_v13 }
 0x313   :  { %v1407_v14 = vpop.eup %1406 }
 0x314   :  { %v239_v15 = vsel %vm165_vm6, %v1407_v14, 0.0 }
 0x315   :  { %240 = vadd.xlane.f32.xlu0 %v239_v15  ;;  %v557_v15 = vld [vmem:[%s1931_s4 + $0x10] sm:$0xff] }
 0x329   :  { %177 = vrot.lane.b32.xlu0 %v1582_v36, %s1491_s27 }
 0x33f   :  { %v128_v16 = vpop.f32.mrf.mxu0 }
 0x340   :  { %v1624_v17 = vadd.f32 %v128_v16, %v101_v34  ;;  %v556_v16 = vld [vmem:[%s1931_s4 + $0x8] sm:$0xff] }
 0x342   :  { %319 = vrot.lane.b32.xlu2 %v1624_v17, %s1488_s21  ;;  %387 = vrot.lane.b32.xlu0 %v1624_v17, %s1487_s7 }
 0x343   :  { %389 = vrot.lane.b32.xlu1 %v1624_v17, %s1489_s22 }
 0x37a   :  { %v174_v20 = vpop.xlane.xlu0 %173 }
 0x37b   :  { %1408 = vrcp.f32 %v174_v20 }
 0x381   :  { %v1409_v22 = vpop.eup %1408 }
 0x382   :  { %v176_v24 = vmul.f32 %v1409_v22, %v1405_v9 }
 0x388   :  { %v241_v21 = vpop.xlane.xlu0 %240 }
 0x389   :  { %1410 = vrcp.f32 %v241_v21 }
 0x38f   :  { %v1411_v28 = vpop.eup %1410 }
 0x390   :  { %v243_v29 = vmul.f32 %v1411_v28, %v1407_v14  ;;  %v558_v14 = vld [vmem:[%s1931_s4 + $0x18] sm:$0xff] }
 0x39b   :  { %v178_v23 = vpop.permute.xlu0 %177 }
 0x39c   :  { %198 = vmatpush.msra.mxu2 %v178_v23  ;;  %v320_v30 = vpop.permute.xlu2 %319 }
 0x39d   :  { %1323 = vmatmul.msk.f32.vlgmr.msra.gmra.mxu2 %vm165_vm6, %v176_v24 }
 0x39e   :  { %265 = vmatpush.msrb.mxu2 %v245_v26 }
 0x3a0   :  { %287 = vmatpush.msra.mxu2 %v96_v25 }
 0x3a2   :  { %288 = vmatpush.msra.mxu2 %v95_v27 }
 0x3a5   :  { %1326 = vmatmul.msk.f32.vlgmr.msrb.gmra.mxu2 %vm165_vm6, %v243_v29  ;;  %v549_v29 = vperm.slane %v1577_v33, 3 }
 0x3a6   :  { %1330 = vmatpush.xpose.msk.msrb.mxu2 %vm135_vm5, %v320_v30 }
 0x3b4   :  { %v388_v35 = vpop.permute.xlu0 %387 }
 0x3b5   :  { %v390_v31 = vpop.permute.xlu1 %389 }
 0x3b6   :  { %1333 = vmatpush.xpose.msk.msra.mxu3 %vm135_vm5, %v390_v31 }
 0x420   :  { %v200_v34 = vpop.f32.mrf.mxu2 }
 0x421   :  { %1328 = vmatmul.msk.f32.vlgmr.msrb.gmra.mxu3 %vm135_vm5, %v200_v34  ;;  %v552_v34 = vperm.slane %v1577_v33, 4 }
 0x428   :  { %v267_v36 = vpop.f32.mrf.mxu2 }
 0x429   :  { %1327 = vmatmul.msk.f32.vlgmr.msra.gmra.mxu2 %vm135_vm5, %v267_v36  ;;  %1334 = vmatmul.msk.f32.vlgmr.msra.gmra.mxu3 %vm135_vm5, %v388_v35 }
 0x42a   :  { %471 = vmatpush.msra.mxu2 %v96_v25 }
 0x42c   :  { %472 = vmatpush.msra.mxu2 %v95_v27 }
 0x431   :  { %1331 = vmatmul.msk.f32.vlgmr.msrb.gmra.mxu2 %vm135_vm5, %v1624_v17 }
 0x4a4   :  { %v313_v37 = vpop.f32.mrf.mxu3 }
 0x4ac   :  { %v290_v39 = vpop.f32.mrf.mxu2  ;;  %v412_v40 = vpop.f32.mrf.mxu3 }
 0x4ad   :  { %v314_v41 = vadd.f32 %v313_v37, %v290_v39  ;;  %v415_v42 = vmul.f32 0.25, %v412_v40 }
 0x4af   :  { %v416_v43 = vadd.f32 %v1662_v38, %v415_v42  ;;  %v501_v61 = vadd.f32 %v500_v58, %v314_v41 }
 0x4b1   :  { %v417_v44 = vsel %vm165_vm6, %v416_v43, -inf  ;;  %v503_v63 = vadd.f32 %v501_v61, %v1570_v32 }
 0x4b2   :  { %418 = vmax.xlane.f32.xlu0 %v417_v44 }
 0x4b3   :  { %v505_v0 = vsel %vm34_vm0, %v503_v63, 0.0 }
 0x4b4   :  { %v342_v45 = vpop.f32.mrf.mxu2 }
 0x4b5   :  { %v345_v46 = vmul.f32 0.25, %v342_v45 }
 0x4b7   :  { %v349_v48 = vadd.f32 %v1662_v38, %v345_v46 }
 0x4b9   :  { %v350_v49 = vsel %vm165_vm6, %v349_v48, -inf }
 0x4ba   :  { %351 = vmax.xlane.f32.xlu2 %v350_v49 }
 0x4d2   :  { %428 = vrot.lane.b32.xlu2 %v1624_v17, %s1490_s25 }
 0x525   :  { %v419_v50 = vpop.xlane.xlu0 %418 }
 0x526   :  { %v420_v51 = vsub.f32 %v416_v43, %v419_v50  ;;  %v614_v50 = vld [vmem:[%s1932_s5 + $0x38] sm:$0xff] }
 0x528   :  { %v421_v52 = vmul.f32 1.442695, %v420_v51  ;;  %v613_v51 = vld [vmem:[%s1932_s5 + $0x30] sm:$0xff] }
 0x52a   :  { %1412 = vpow2.f32 %v421_v52  ;;  %v559_v52 = vperm.slane %v1577_v33, 1 }
 0x52d   :  { %v352_v53 = vpop.xlane.xlu2 %351 }
 0x52e   :  { %v353_v54 = vsub.f32 %v349_v48, %v352_v53  ;;  %v611_v53 = vld [vmem:[%s1932_s5 + $0x20] sm:$0xff] }
 0x530   :  { %v1413_v55 = vpop.eup %1412  ;;  %v354_v56 = vmul.f32 1.442695, %v353_v54 }
 0x531   :  { %v423_v57 = vsel %vm165_vm6, %v1413_v55, 0.0 }
 0x532   :  { %1414 = vpow2.f32 %v354_v56  ;;  %424 = vadd.xlane.f32.xlu1 %v423_v57  ;;  %v609_v57 = vld [vmem:[%s1932_s5 + $0x10] sm:$0xff] }
 0x535   :  { %v429_v59 = vpop.permute.xlu2 %428 }
 0x536   :  { %449 = vmatpush.msrb.mxu0 %v429_v59  ;;  %v608_v59 = vld [vmem:[%s1932_s5 + $0x8] sm:$0xff] }
 0x538   :  { %v1415_v60 = vpop.eup %1414  ;;  %578 = vmatpush.msra.mxu0 %v558_v14 }
 0x539   :  { %v356_v62 = vsel %vm165_vm6, %v1415_v60, 0.0 }
 0x53a   :  { %357 = vadd.xlane.f32.xlu0 %v356_v62  ;;  %579 = vmatpush.msra.mxu0 %v557_v15  ;;  %v607_v62 = vld [vmem:[%s1932_s5] sm:$0xff] }
 0x53c   :  { %580 = vmatpush.msra.mxu0 %v556_v16 }
 0x542   :  { %506 = vadd.xlane.f32.xlu0 %v505_v0 }
 0x54b   :  { %361 = vrot.lane.b32.xlu1 %v1624_v17, %s1491_s27  ;;  %v555_v17 = vld [vmem:[%s1931_s4] sm:$0xff] }
 0x54c   :  { %581 = vmatpush.msra.mxu0 %v555_v17 }
 0x5a5   :  { %v425_v1 = vpop.xlane.xlu1 %424 }
 0x5a6   :  { %1416 = vrcp.f32 %v425_v1 }
 0x5ac   :  { %v1417_v2 = vpop.eup %1416 }
 0x5ad   :  { %v358_v3 = vpop.xlane.xlu0 %357  ;;  %v427_v5 = vmul.f32 %v1417_v2, %v1413_v55  ;;  %v610_v55 = vld [vmem:[%s1932_s5 + $0x18] sm:$0xff] }
 0x5ae   :  { %1418 = vrcp.f32 %v358_v3 }
 0x5af   :  { %1335 = vmatmul.msk.f32.vlgmr.msrb.gmra.mxu0 %vm165_vm6, %v427_v5 }
 0x5b0   :  { %631 = vmatpush.msrb.mxu0 %v614_v50 }
 0x5b2   :  { %632 = vmatpush.msrb.mxu0 %v613_v51 }
 0x5b4   :  { %v1419_v10 = vpop.eup %1418 }
 0x5b5   :  { %v507_v6 = vpop.xlane.xlu0 %506  ;;  %v360_v13 = vmul.f32 %v1419_v10, %v1415_v60 }
 0x5b6   :  { %v511_v7 = vmul.f32 %v507_v6, %v1544_v8 }
 0x5b8   :  { %v513_v9 = vsub.f32 %v503_v63, %v511_v7 }
 0x5ba   :  { %v515_v32 = vmul.f32 %v513_v9, %v513_v9 }
 0x5bc   :  { %v517_v11 = vsel %vm34_vm0, %v515_v32, 0.0 }
 0x5bd   :  { %v362_v12 = vpop.permute.xlu1 %361  ;;  %518 = vadd.xlane.f32.xlu0 %v517_v11 }
 0x5be   :  { %382 = vmatpush.msrb.mxu1 %v362_v12 }
 0x5bf   :  { %1332 = vmatmul.msk.f32.vlgmr.msrb.gmra.mxu1 %vm165_vm6, %v360_v13 }
 0x5c0   :  { %494 = vmatpush.msra.mxu1 %v1635_v18 }
 0x5c2   :  { %495 = vmatpush.msra.mxu1 %v1640_v19 }
 0x62c   :  { %v451_v18 = vpop.f32.mrf.mxu0 }
 0x62d   :  { %1336 = vmatmul.msk.f32.vlgmr.msra.gmra.mxu2 %vm135_vm5, %v451_v18 }
 0x630   :  { %v519_v19 = vpop.xlane.xlu0 %518 }
 0x631   :  { %v523_v20 = vmul.f32 %v519_v19, %v1544_v8 }
 0x633   :  { %v525_v21 = vadd.f32 1e-12, %v523_v20 }
 0x635   :  { %1420 = vrsqrt.f32 %v525_v21  ;;  %vm533_vm11 = vweird.f32 %v525_v21 }
 0x63b   :  { %v1421_v22 = vpop.eup %1420 }
 0x63c   :  { %v528_v23 = vmul.f32 %v1421_v22, %v525_v21  ;;  %v384_v24 = vpop.f32.mrf.mxu1  ;;  %vm534_vm10 = vweird.f32 %v1421_v22 }
 0x63d   :  { %1337 = vmatmul.msk.f32.vlgmr.msra.gmra.mxu1 %vm135_vm5, %v384_v24  ;;  %vm535_vm12 = vmor %vm533_vm11, %vm534_vm10 }
 0x63e   :  { %v529_v25 = vmul.f32 %v1421_v22, %v528_v23 }
 0x640   :  { %v530_v26 = vmul.f32 0.5, %v529_v25 }
 0x642   :  { %v531_v27 = vsub.f32 1.5, %v530_v26 }
 0x644   :  { %v532_v28 = vmul.f32 %v1421_v22, %v531_v27 }
 0x646   :  { %v536_v30 = vsel %vm535_vm12, %v1421_v22, %v532_v28  ;;  %v615_v22 = vperm.slane %v1577_v33, 5 }
 0x647   :  { %v547_v31 = vmul.f32 %v536_v30, %v513_v9 }
 0x649   :  { %v550_v35 = vmul.f32 %v549_v29, %v547_v31 }
 0x64b   :  { %v1702_v36 = vadd.f32 %v552_v34, %v550_v35 }
 0x64d   :  { %1338 = vmatmul.msk.f32.vlgmr.msra.gmra.mxu0 %vm34_vm0, %v1702_v36 }
 0x6b0   :  { %v474_v37 = vpop.f32.mrf.mxu2 }
 0x6ba   :  { %v497_v39 = vpop.f32.mrf.mxu1 }
 0x6bb   :  { %v498_v40 = vadd.f32 %v497_v39, %v474_v37 }
 0x6bd   :  { %v502_v41 = vadd.f32 %v500_v58, %v498_v40 }
 0x6bf   :  { %v504_v42 = vadd.f32 %v502_v41, %v1614_v4  ;;  %v612_v4 = vld [vmem:[%s1932_s5 + $0x28] sm:$0xff] }
 0x6c0   :  { %633 = vmatpush.msrb.mxu0 %v612_v4 }
 0x6c1   :  { %v508_v43 = vsel %vm34_vm0, %v504_v42, 0.0 }
 0x6c2   :  { %509 = vadd.xlane.f32.xlu0 %v508_v43  ;;  %634 = vmatpush.msrb.mxu0 %v611_v53 }
 0x6c4   :  { %635 = vmatpush.msrb.mxu0 %v610_v55 }
 0x6c6   :  { %636 = vmatpush.msrb.mxu0 %v609_v57 }
 0x6c8   :  { %637 = vmatpush.msrb.mxu0 %v608_v59  ;;  %v695_v59 = vperm.slane %v1577_v33, 7 }
 0x6ca   :  { %v583_v54 = vpop.f32.mrf.mxu0  ;;  %638 = vmatpush.msrb.mxu0 %v607_v62  ;;  %v1771_v62 = vld [vmem:[%s1933_s6 + $0x8] sm:$0xff] }
 0x6cb   :  { %v584_v56 = vadd.f32 %v583_v54, %v559_v52 }
 0x6cd   :  { %v591_v61 = vmul.f32 0.044715, %v584_v56  ;;  %v589_v17 = vmul.f32 0.5, %v584_v56 }
 0x6cf   :  { %v593_v0 = vmul.f32 %v591_v61, %v584_v56 }
 0x6d1   :  { %v595_v1 = vmul.f32 %v593_v0, %v584_v56 }
 0x6d3   :  { %v597_v5 = vadd.f32 %v595_v1, %v584_v56  ;;  %v692_v56 = vperm.slane %v1577_v33, 6 }
 0x6d5   :  { %v599_v9 = vmul.f32 0.7978846, %v597_v5 }
 0x735   :  { %v510_v44 = vpop.xlane.xlu0 %509 }
 0x736   :  { %v512_v45 = vmul.f32 %v510_v44, %v1544_v8  ;;  %v1349_v44 = vld [vmem:[%s1929_s2 + $0x30] sm:$0xff] }
 0x738   :  { %v514_v46 = vsub.f32 %v504_v42, %v512_v45  ;;  %v1348_v45 = vld [vmem:[%s1929_s2 + $0x28] sm:$0xff] }
 0x73a   :  { %v516_v48 = vmul.f32 %v514_v46, %v514_v46 }
 0x73c   :  { %v520_v49 = vsel %vm34_vm0, %v516_v48, 0.0 }
 0x73d   :  { %521 = vadd.xlane.f32.xlu2 %v520_v49 }
 0x7b0   :  { %v522_v58 = vpop.xlane.xlu2 %521 }
 0x7b1   :  { %v524_v60 = vmul.f32 %v522_v58, %v1544_v8 }
 0x7b3   :  { %v526_v63 = vadd.f32 1e-12, %v524_v60 }
 0x7b5   :  { %1422 = vrsqrt.f32 %v526_v63  ;;  %vm543_vm14 = vweird.f32 %v526_v63 }
 0x7b6   :  { %1424 = vtanh.f32 %v599_v9 }
 0x7bb   :  { %v1423_v2 = vpop.eup %1422 }
 0x7bc   :  { %v538_v3 = vmul.f32 %v1423_v2, %v526_v63  ;;  %vm544_vm13 = vweird.f32 %v1423_v2  ;;  %v1425_v15 = vpop.eup %1424  ;;  %v710_v63 = vperm.slane %v1771_v62, 0 }
 0x7bd   :  { %vm545_vm15 = vmor %vm543_vm14, %vm544_vm13  ;;  %v603_v16 = vadd.f32 1.0, %v1425_v15 }
 0x7be   :  { %v539_v6 = vmul.f32 %v1423_v2, %v538_v3 }
 0x7bf   :  { %v605_v18 = vmul.f32 %v603_v16, %v589_v17 }
 0x7c0   :  { %v540_v7 = vmul.f32 0.5, %v539_v6 }
 0x7c2   :  { %v541_v10 = vsub.f32 1.5, %v540_v7 }
 0x7c4   :  { %v542_v32 = vmul.f32 %v1423_v2, %v541_v10 }
 0x7c6   :  { %v546_v11 = vsel %vm545_vm15, %v1423_v2, %v542_v32 }
 0x7c7   :  { %v548_v12 = vmul.f32 %v546_v11, %v514_v46  ;;  %v1347_v46 = vld [vmem:[%s1929_s2 + $0x20] sm:$0xff] }
 0x7c9   :  { %v551_v13 = vmul.f32 %v549_v29, %v548_v12 }
 0x7cb   :  { %v1738_v14 = vadd.f32 %v552_v34, %v551_v13 }
 0x7cd   :  { %1339 = vmatmul.msk.f32.gmra.mxu0 %vm34_vm0, %v1738_v14 }
 0x7d5   :  { %1340 = vmatmul.msk.f32.vlgmr.msrb.gmra.mxu0 %vm616_vm1, %v605_v18 }
 0x84a   :  { %v586_v19 = vpop.f32.mrf.mxu0 }
 0x84b   :  { %v587_v20 = vadd.f32 %v586_v19, %v559_v52 }
 0x84d   :  { %v592_v21 = vmul.f32 0.044715, %v587_v20  ;;  %v590_v34 = vmul.f32 0.5, %v587_v20 }
 0x84f   :  { %v594_v23 = vmul.f32 %v592_v21, %v587_v20 }
 0x851   :  { %v596_v24 = vmul.f32 %v594_v23, %v587_v20 }
 0x852   :  { %v640_v25 = vpop.f32.mrf.mxu0 }
 0x853   :  { %v641_v26 = vadd.f32 %v640_v25, %v615_v22  ;;  %v598_v27 = vadd.f32 %v596_v24, %v587_v20 }
 0x855   :  { %v646_v28 = vadd.f32 %v641_v26, %v1702_v36  ;;  %v600_v29 = vmul.f32 0.7978846, %v598_v27  ;;  %v1350_v36 = vld [vmem:[%s1929_s2 + $0x38] sm:$0xff] }
 0x856   :  { %729 = vmatpush.msrb.mxu2 %v1350_v36 }
 0x857   :  { %v648_v30 = vsel %vm34_vm0, %v646_v28, 0.0  ;;  %1426 = vtanh.f32 %v600_v29 }
 0x858   :  { %649 = vadd.xlane.f32.xlu0 %v648_v30  ;;  %730 = vmatpush.msrb.mxu2 %v1349_v44 }
 0x85a   :  { %731 = vmatpush.msrb.mxu2 %v1348_v45 }
 0x85c   :  { %732 = vmatpush.msrb.mxu2 %v1347_v46 }
 0x85d   :  { %v1427_v31 = vpop.eup %1426 }
 0x85e   :  { %v604_v35 = vadd.f32 1.0, %v1427_v31 }
 0x860   :  { %v606_v37 = vmul.f32 %v604_v35, %v590_v34 }
 0x862   :  { %1341 = vmatmul.msk.f32.gmra.mxu0 %vm616_vm1, %v606_v37 }
 0x8cb   :  { %v650_v39 = vpop.xlane.xlu0 %649 }
 0x8cc   :  { %v654_v40 = vmul.f32 %v650_v39, %v1544_v8 }
 0x8ce   :  { %v656_v41 = vsub.f32 %v646_v28, %v654_v40 }
 0x8d0   :  { %v658_v42 = vmul.f32 %v656_v41, %v656_v41 }
 0x8d2   :  { %v660_v43 = vsel %vm34_vm0, %v658_v42, 0.0 }
 0x8d3   :  { %661 = vadd.xlane.f32.xlu1 %v660_v43 }
 0x8df   :  { %v643_v33 = vpop.f32.mrf.mxu0 }
 0x8e0   :  { %v644_v2 = vadd.f32 %v643_v33, %v615_v22 }
 0x8e2   :  { %v647_v3 = vadd.f32 %v644_v2, %v1738_v14 }
 0x8e4   :  { %v651_v5 = vsel %vm34_vm0, %v647_v3, 0.0 }
 0x946   :  { %v662_v48 = vpop.xlane.xlu1 %661 }
 0x947   :  { %v666_v49 = vmul.f32 %v662_v48, %v1544_v8 }
 0x949   :  { %v668_v50 = vadd.f32 1e-12, %v666_v49 }
 0x94b   :  { %1428 = vrsqrt.f32 %v668_v50  ;;  %vm676_vm3 = vweird.f32 %v668_v50 }
 0x951   :  { %v1429_v51 = vpop.eup %1428 }
 0x952   :  { %v671_v4 = vmul.f32 %v1429_v51, %v668_v50  ;;  %vm677_vm2 = vweird.f32 %v1429_v51 }
 0x953   :  { %vm678_vm4 = vmor %vm676_vm3, %vm677_vm2 }
 0x954   :  { %v672_v52 = vmul.f32 %v1429_v51, %v671_v4 }
 0x956   :  { %v673_v53 = vmul.f32 0.5, %v672_v52 }
 0x958   :  { %v674_v54 = vsub.f32 1.5, %v673_v53 }
 0x95a   :  { %v675_v55 = vmul.f32 %v1429_v51, %v674_v54 }
 0x95c   :  { %v679_v57 = vsel %vm678_vm4, %v1429_v51, %v675_v55  ;;  %v1346_v55 = vld [vmem:[%s1930_s3 + $0x38] sm:$0xff] }
 0x95d   :  { %v690_v58 = vmul.f32 %v679_v57, %v656_v41 }
 0x95f   :  { %v693_v60 = vmul.f32 %v692_v56, %v690_v58 }
 0x961   :  { %v1764_v61 = vadd.f32 %v695_v59, %v693_v60 }
 0x963   :  { %1351 = vmatmul.msk.f32.vlgmr.msrb.gmra.mxu2 %vm34_vm0, %v1764_v61 }
 0x9e6   :  { %v734_v0 = vpop.f32.mrf.mxu2 }
 0x9e7   :  { %v735_v1 = vadd.f32 %v734_v0, %v710_v63 }
 0x9e9   :  { %741 = vrot.lane.b32.xlu2 %v735_v1, %s1488_s21  ;;  %808 = vrot.lane.b32.xlu0 %v735_v1, %s1489_s22 }
 0x9f1   :  { %847 = vrot.lane.b32.xlu2 %v735_v1, %s1490_s25  ;;  %806 = vrot.lane.b32.xlu0 %v735_v1, %s1487_s7 }
 0xa1b   :  { %652 = vadd.xlane.f32.xlu0 %v651_v5 }
 0xa43   :  { %v742_v6 = vpop.permute.xlu2 %741 }
 0xa44   :  { %1353 = vmatpush.xpose.msk.msrb.mxu1 %vm135_vm5, %v742_v6  ;;  %v1343_v6 = vld [vmem:[%s1930_s3 + $0x20] sm:$0xff] }
 0xa47   :  { %1354 = vmatmul.msk.f32.vlgmr.msrb.gmra.mxu1 %vm135_vm5, %v735_v1 }
 0xa4b   :  { %v848_v7 = vpop.permute.xlu2 %847 }
 0xa4c   :  { %868 = vmatpush.msra.mxu2 %v848_v7 }
 0xa5b   :  { %v809_v9 = vpop.permute.xlu0 %808 }
 0xa5c   :  { %1356 = vmatpush.xpose.msk.msrb.mxu3 %vm135_vm5, %v809_v9 }
 0xa63   :  { %v807_v10 = vpop.permute.xlu0 %806 }
 0xa64   :  { %1357 = vmatmul.msk.f32.vlgmr.msrb.gmra.mxu3 %vm135_vm5, %v807_v10 }
 0xa8e   :  { %v653_v32 = vpop.xlane.xlu0 %652 }
 0xa8f   :  { %v655_v11 = vmul.f32 %v653_v32, %v1544_v8 }
 0xa91   :  { %v657_v12 = vsub.f32 %v647_v3, %v655_v11 }
 0xa93   :  { %v659_v13 = vmul.f32 %v657_v12, %v657_v12 }
 0xa95   :  { %v663_v14 = vsel %vm34_vm0, %v659_v13, 0.0 }
 0xa96   :  { %664 = vadd.xlane.f32.xlu1 %v663_v14 }
 0xac4   :  { %v764_v39 = vpop.f32.mrf.mxu1 }
 0xac5   :  { %v767_v41 = vmul.f32 0.25, %v764_v39 }
 0xac7   :  { %v768_v43 = vadd.f32 %v1606_v47, %v767_v41 }
 0xac9   :  { %v769_v36 = vsel %vm165_vm6, %v768_v43, -inf }
 0xae7   :  { %v831_v15 = vpop.f32.mrf.mxu3 }
 0xae8   :  { %v834_v16 = vmul.f32 0.25, %v831_v15 }
 0xaea   :  { %v835_v17 = vadd.f32 %v1606_v47, %v834_v16 }
 0xaec   :  { %v836_v18 = vsel %vm165_vm6, %v835_v17, -inf }
 0xaed   :  { %837 = vmax.xlane.f32.xlu1 %v836_v18 }
 0xb09   :  { %v665_v19 = vpop.xlane.xlu1 %664 }
 0xb0a   :  { %v667_v20 = vmul.f32 %v665_v19, %v1544_v8  ;;  %v1098_v19 = vperm.slane %v1771_v62, 2 }
 0xb0c   :  { %v669_v21 = vadd.f32 1e-12, %v667_v20 }
 0xb0e   :  { %1430 = vrsqrt.f32 %v669_v21  ;;  %vm686_vm8 = vweird.f32 %v669_v21 }
 0xb14   :  { %v1431_v22 = vpop.eup %1430 }
 0xb15   :  { %v681_v23 = vmul.f32 %v1431_v22, %v669_v21  ;;  %vm687_vm7 = vweird.f32 %v1431_v22 }
 0xb16   :  { %vm688_vm9 = vmor %vm686_vm8, %vm687_vm7 }
 0xb17   :  { %v682_v24 = vmul.f32 %v1431_v22, %v681_v23 }
 0xb19   :  { %v683_v25 = vmul.f32 0.5, %v682_v24 }
 0xb1b   :  { %v684_v26 = vsub.f32 1.5, %v683_v25 }
 0xb1d   :  { %v685_v27 = vmul.f32 %v1431_v22, %v684_v26 }
 0xb1f   :  { %v689_v28 = vsel %vm688_vm9, %v1431_v22, %v685_v27 }
 0xb20   :  { %v691_v29 = vmul.f32 %v689_v28, %v657_v12 }
 0xb22   :  { %v694_v30 = vmul.f32 %v692_v56, %v691_v29  ;;  %v1345_v56 = vld [vmem:[%s1930_s3 + $0x30] sm:$0xff] }
 0xb24   :  { %v1791_v31 = vadd.f32 %v695_v59, %v694_v30 }
 0xb26   :  { %1352 = vmatmul.msk.f32.gmra.mxu2 %vm34_vm0, %v1791_v31 }
 0xb60   :  { %v838_v34 = vpop.xlane.xlu1 %837 }
 0xb61   :  { %v839_v35 = vsub.f32 %v835_v17, %v838_v34 }
 0xb63   :  { %v840_v37 = vmul.f32 1.442695, %v839_v35 }
 0xb65   :  { %1432 = vpow2.f32 %v840_v37 }
 0xb6b   :  { %v1433_v40 = vpop.eup %1432 }
 0xb6c   :  { %v842_v42 = vsel %vm165_vm6, %v1433_v40, 0.0 }
 0xb6d   :  { %843 = vadd.xlane.f32.xlu1 %v842_v42 }
 0xb75   :  { %770 = vmax.xlane.f32.xlu1 %v769_v36 }
 0xb8e   :  { %780 = vrot.lane.b32.xlu1 %v735_v1, %s1491_s27  ;;  %v1344_v1 = vld [vmem:[%s1930_s3 + $0x28] sm:$0xff]  ;;  %s1494_s3 = smov 1  }
 0xb8f   :  { %913 = vmatpush.msra.mxu3 %v1344_v1 }
 0xb91   :  { %914 = vmatpush.msra.mxu3 %v1343_v6 }
 0xba9   :  { %v737_v44 = vpop.f32.mrf.mxu2 }
 0xbaa   :  { %v1801_v45 = vadd.f32 %v737_v44, %v710_v63  ;;  %v1372_v44 = vld [vmem:[%s1931_s4 + $0x38] sm:$0xff] }
 0xbac   :  { %920 = vrot.lane.b32.xlu0 %v1801_v45, %s1488_s21  ;;  %985 = vrot.lane.b32.xlu1 %v1801_v45, %s1487_s7 }
 0xbb4   :  { %987 = vrot.lane.b32.xlu0 %v1801_v45, %s1489_s22 }
 0xbe0   :  { %v844_v47 = vpop.xlane.xlu1 %843 }
 0xbe1   :  { %1434 = vrcp.f32 %v844_v47  ;;  %v1370_v47 = vld [vmem:[%s1931_s4 + $0x28] sm:$0xff] }
 0xbe7   :  { %v1435_v46 = vpop.eup %1434 }
 0xbe8   :  { %v846_v48 = vmul.f32 %v1435_v46, %v1433_v40  ;;  %v771_v49 = vpop.xlane.xlu1 %770  ;;  %v1369_v46 = vld [vmem:[%s1931_s4 + $0x20] sm:$0xff] }
 0xbe9   :  { %v772_v50 = vsub.f32 %v768_v43, %v771_v49 }
 0xbea   :  { %1358 = vmatmul.msk.f32.vlgmr.msra.gmra.mxu2 %vm165_vm6, %v846_v48 }
 0xbeb   :  { %v773_v51 = vmul.f32 1.442695, %v772_v50 }
 0xbed   :  { %1436 = vpow2.f32 %v773_v51 }
 0xbf3   :  { %v1437_v4 = vpop.eup %1436 }
 0xbf4   :  { %v775_v52 = vsel %vm165_vm6, %v1437_v4, 0.0 }
 0xbf5   :  { %776 = vadd.xlane.f32.xlu2 %v775_v52 }
 0xc00   :  { %v781_v53 = vpop.permute.xlu1 %780 }
 0xc01   :  { %801 = vmatpush.msra.mxu1 %v781_v53 }
 0xc03   :  { %890 = vmatpush.msrb.mxu1 %v1346_v55 }
 0xc05   :  { %891 = vmatpush.msrb.mxu1 %v1345_v56 }
 0xc1e   :  { %v921_v54 = vpop.permute.xlu0 %920  ;;  %v986_v0 = vpop.permute.xlu1 %985 }
 0xc1f   :  { %1361 = vmatpush.xpose.msk.msra.mxu0 %vm135_vm5, %v921_v54 }
 0xc22   :  { %1362 = vmatmul.msk.f32.vlgmr.msra.gmra.mxu0 %vm135_vm5, %v1801_v45 }
 0xc23   :  { %1069 = vmatpush.msrb.mxu0 %v1346_v55 }
 0xc25   :  { %1070 = vmatpush.msrb.mxu0 %v1345_v56  ;;  %v1147_v56 = vperm.slane %v1771_v62, 3 }
 0xc26   :  { %v988_v60 = vpop.permute.xlu0 %987 }
 0xc68   :  { %v777_v57 = vpop.xlane.xlu2 %776 }
 0xc69   :  { %1438 = vrcp.f32 %v777_v57 }
 0xc6d   :  { %v870_v63 = vpop.f32.mrf.mxu2 }
 0xc6f   :  { %v1439_v58 = vpop.eup %1438 }
 0xc70   :  { %v779_v59 = vmul.f32 %v1439_v58, %v1437_v4 }
 0xc72   :  { %1355 = vmatmul.msk.f32.vlgmr.msra.gmra.mxu1 %vm165_vm6, %v779_v59  ;;  %v1150_v59 = vperm.slane %v1771_v62, 4 }
 0xc73   :  { %1364 = vmatpush.xpose.msk.msra.mxu1 %vm135_vm5, %v988_v60 }
 0xc7a   :  { %1359 = vmatmul.msk.f32.vlgmr.msrb.gmra.mxu1 %vm135_vm5, %v870_v63 }
 0xc7b   :  { %1177 = vmatpush.msrb.mxu1 %v1372_v44 }
 0xc82   :  { %1365 = vmatmul.msk.f32.vlgmr.msra.gmra.mxu1 %vm135_vm5, %v986_v0 }
 0xc9f   :  { %v943_v33 = vpop.f32.mrf.mxu0 }
 0xca0   :  { %v946_v2 = vmul.f32 0.25, %v943_v33  ;;  %v1382_v33 = vld [vmem:[%s1932_s5 + $0x78] sm:$0xff] }
 0xca2   :  { %v947_v3 = vadd.f32 %v1662_v38, %v946_v2  ;;  %v1381_v2 = vld [vmem:[%s1932_s5 + $0x70] sm:$0xff] }
 0xca4   :  { %v948_v5 = vsel %vm165_vm6, %v947_v3, -inf }
 0xca5   :  { %949 = vmax.xlane.f32.xlu0 %v948_v5  ;;  %v1379_v5 = vld [vmem:[%s1932_s5 + $0x60] sm:$0xff] }
 0xcb9   :  { %1026 = vrot.lane.b32.xlu0 %v1801_v45, %s1490_s25 }
 0xcef   :  { %v803_v7 = vpop.f32.mrf.mxu1 }
 0xcf0   :  { %1360 = vmatmul.msk.f32.vlgmr.msra.gmra.mxu3 %vm135_vm5, %v803_v7  ;;  %v1377_v7 = vld [vmem:[%s1932_s5 + $0x50] sm:$0xff] }
 0xcf7   :  { %v893_v9 = vpop.f32.mrf.mxu1 }
 0xcff   :  { %v1010_v10 = vpop.f32.mrf.mxu1 }
 0xd00   :  { %v1013_v32 = vmul.f32 0.25, %v1010_v10  ;;  %v1375_v10 = vld [vmem:[%s1932_s5 + $0x40] sm:$0xff] }
 0xd02   :  { %v1014_v11 = vadd.f32 %v1662_v38, %v1013_v32  ;;  %v1158_v32 = vperm.slane %v1771_v62, 1 }
 0xd04   :  { %v1015_v12 = vsel %vm165_vm6, %v1014_v11, -inf }
 0xd05   :  { %1016 = vmax.xlane.f32.xlu1 %v1015_v12 }
 0xd18   :  { %v950_v13 = vpop.xlane.xlu0 %949 }
 0xd19   :  { %v951_v14 = vsub.f32 %v947_v3, %v950_v13  ;;  %v1380_v3 = vld [vmem:[%s1932_s5 + $0x68] sm:$0xff] }
 0xd1b   :  { %v952_v15 = vmul.f32 1.442695, %v951_v14 }
 0xd1d   :  { %1440 = vpow2.f32 %v952_v15 }
 0xd23   :  { %v1441_v16 = vpop.eup %1440 }
 0xd24   :  { %v954_v17 = vsel %vm165_vm6, %v1441_v16, 0.0 }
 0xd25   :  { %955 = vadd.xlane.f32.xlu2 %v954_v17 }
 0xd2b   :  { %v1027_v18 = vpop.permute.xlu0 %1026 }
 0xd2c   :  { %1047 = vmatpush.msrb.mxu3 %v1027_v18 }
 0xd2e   :  { %1230 = vmatpush.msra.mxu3 %v1382_v33 }
 0xd30   :  { %1231 = vmatpush.msra.mxu3 %v1381_v2 }
 0xd32   :  { %1232 = vmatpush.msra.mxu3 %v1380_v3 }
 0xd34   :  { %1233 = vmatpush.msra.mxu3 %v1379_v5 }
 0xd73   :  { %v916_v20 = vpop.f32.mrf.mxu3 }
 0xd74   :  { %v917_v21 = vadd.f32 %v916_v20, %v893_v9  ;;  %v1376_v9 = vld [vmem:[%s1932_s5 + $0x48] sm:$0xff] }
 0xd76   :  { %v1099_v38 = vadd.f32 %v1098_v19, %v917_v21 }
 0xd78   :  { %v1017_v22 = vpop.xlane.xlu1 %1016  ;;  %v1101_v23 = vadd.f32 %v1099_v38, %v1764_v61 }
 0xd79   :  { %v1018_v24 = vsub.f32 %v1014_v11, %v1017_v22 }
 0xd7a   :  { %v1103_v25 = vsel %vm34_vm0, %v1101_v23, 0.0 }
 0xd7b   :  { %v1019_v26 = vmul.f32 1.442695, %v1018_v24  ;;  %1104 = vadd.xlane.f32.xlu1 %v1103_v25 }
 0xd7d   :  { %1442 = vpow2.f32 %v1019_v26 }
 0xd83   :  { %v1443_v27 = vpop.eup %1442 }
 0xd84   :  { %v1021_v28 = vsel %vm165_vm6, %v1443_v27, 0.0 }
 0xd85   :  { %1022 = vadd.xlane.f32.xlu2 %v1021_v28 }
 0xd98   :  { %v956_v34 = vpop.xlane.xlu2 %955 }
 0xd99   :  { %1444 = vrcp.f32 %v956_v34 }
 0xd9d   :  { %959 = vrot.lane.b32.xlu2 %v1801_v45, %s1491_s27  ;;  %v1371_v45 = vld [vmem:[%s1931_s4 + $0x30] sm:$0xff] }
 0xd9e   :  { %1178 = vmatpush.msrb.mxu1 %v1371_v45 }
 0xd9f   :  { %v1445_v40 = vpop.eup %1444 }
 0xda0   :  { %v958_v42 = vmul.f32 %v1445_v40, %v1441_v16  ;;  %1179 = vmatpush.msrb.mxu1 %v1370_v47 }
 0xda2   :  { %1180 = vmatpush.msrb.mxu1 %v1369_v46 }
 0xdee   :  { %v1105_v29 = vpop.xlane.xlu1 %1104 }
 0xdef   :  { %v1109_v30 = vmul.f32 %v1105_v29, %v1544_v8 }
 0xdf1   :  { %v1111_v35 = vsub.f32 %v1101_v23, %v1109_v30 }
 0xdf3   :  { %v1113_v37 = vmul.f32 %v1111_v35, %v1111_v35 }
 0xdf5   :  { %v1115_v61 = vsel %vm34_vm0, %v1113_v37, 0.0 }
 0xdf6   :  { %1116 = vadd.xlane.f32.xlu1 %v1115_v61 }
 0xdf8   :  { %v1023_v39 = vpop.xlane.xlu2 %1022 }
 0xdf9   :  { %1446 = vrcp.f32 %v1023_v39 }
 0xdff   :  { %v1447_v41 = vpop.eup %1446 }
 0xe00   :  { %v1025_v43 = vmul.f32 %v1447_v41, %v1443_v27  ;;  %v960_v36 = vpop.permute.xlu2 %959 }
 0xe01   :  { %980 = vmatpush.msrb.mxu2 %v960_v36 }
 0xe02   :  { %1363 = vmatmul.msk.f32.vlgmr.msrb.gmra.mxu2 %vm165_vm6, %v958_v42  ;;  %1366 = vmatmul.msk.f32.vlgmr.msrb.gmra.mxu3 %vm165_vm6, %v1025_v43 }
 0xe03   :  { %1092 = vmatpush.msra.mxu2 %v1344_v1 }
 0xe05   :  { %1093 = vmatpush.msra.mxu2 %v1343_v6  ;;  %v1378_v6 = vld [vmem:[%s1932_s5 + $0x58] sm:$0xff]  ;;  %s1492_s5 = smov [#allocation2]  }
 0xe06   :  { %1234 = vmatpush.msra.mxu3 %v1378_v6  ;;  %s1305_s22 = sshll.u32 %s1492_s5, 4  ;;  %s1306_s22 = int_to_ptr.vmem [resolvable:$true] %s1305_s22 }
 0xe08   :  { %1235 = vmatpush.msra.mxu3 %v1377_v7 }
 0xe0a   :  { %1236 = vmatpush.msra.mxu3 %v1376_v9 }
 0xe0c   :  { %1237 = vmatpush.msra.mxu3 %v1375_v10 }
 0xe69   :  { %v1117_v48 = vpop.xlane.xlu1 %1116 }
 0xe6a   :  { %v1121_v49 = vmul.f32 %v1117_v48, %v1544_v8 }
 0xe6c   :  { %v1123_v50 = vadd.f32 1e-12, %v1121_v49 }
 0xe6e   :  { %1448 = vrsqrt.f32 %v1123_v50  ;;  %vm1131_vm10 = vweird.f32 %v1123_v50 }
 0xe74   :  { %v1449_v51 = vpop.eup %1448 }
 0xe75   :  { %v1126_v4 = vmul.f32 %v1449_v51, %v1123_v50  ;;  %vm1132_vm6 = vweird.f32 %v1449_v51 }
 0xe76   :  { %vm1133_vm11 = vmor %vm1131_vm10, %vm1132_vm6 }
 0xe77   :  { %v1127_v52 = vmul.f32 %v1449_v51, %v1126_v4 }
 0xe79   :  { %v1128_v53 = vmul.f32 0.5, %v1127_v52 }
 0xe7b   :  { %v1129_v54 = vsub.f32 1.5, %v1128_v53 }
 0xe7d   :  { %v1130_v55 = vmul.f32 %v1449_v51, %v1129_v54 }
 0xe7f   :  { %v1134_v57 = vsel %vm1133_vm11, %v1449_v51, %v1130_v55 }
 0xe80   :  { %v1145_v58 = vmul.f32 %v1134_v57, %v1111_v35 }
 0xe82   :  { %v1148_v60 = vmul.f32 %v1147_v56, %v1145_v58 }
 0xe84   :  { %v1151_v63 = vadd.f32 %v1150_v59, %v1148_v60 }
 0xe85   :  { %v982_v0 = vpop.f32.mrf.mxu2  ;;  %v1049_v1 = vpop.f32.mrf.mxu3 }
 0xe86   :  { %1367 = vmatmul.msk.f32.vlgmr.msrb.gmra.mxu0 %vm135_vm5, %v1049_v1  ;;  %1368 = vmatmul.msk.f32.vlgmr.msra.gmra.mxu2 %vm135_vm5, %v982_v0 }
 0xe87   :  { %1373 = vmatmul.msk.f32.vlgmr.msrb.gmra.mxu1 %vm34_vm0, %v1151_v63 }
 0xf03   :  { %v1072_v14 = vpop.f32.mrf.mxu0 }
 0xf04   :  { %v1182_v11 = vpop.f32.mrf.mxu1 }
 0xf05   :  { %v1183_v12 = vadd.f32 %v1182_v11, %v1158_v32 }
 0xf07   :  { %v1190_v13 = vmul.f32 0.044715, %v1183_v12  ;;  %v1188_v25 = vmul.f32 0.5, %v1183_v12 }
 0xf09   :  { %v1192_v15 = vmul.f32 %v1190_v13, %v1183_v12  ;;  %v1095_v16 = vpop.f32.mrf.mxu2 }
 0xf0a   :  { %v1096_v17 = vadd.f32 %v1095_v16, %v1072_v14 }
 0xf0b   :  { %v1194_v18 = vmul.f32 %v1192_v15, %v1183_v12 }
 0xf0c   :  { %v1100_v20 = vadd.f32 %v1098_v19, %v1096_v17 }
 0xf0d   :  { %v1196_v21 = vadd.f32 %v1194_v18, %v1183_v12 }
 0xf0e   :  { %v1102_v38 = vadd.f32 %v1100_v20, %v1791_v31  ;;  %v1215_v31 = vperm.slane %v1771_v62, 5 }
 0xf0f   :  { %v1198_v22 = vmul.f32 0.7978846, %v1196_v21 }
 0xf10   :  { %v1106_v23 = vsel %vm34_vm0, %v1102_v38, 0.0 }
 0xf11   :  { %1450 = vtanh.f32 %v1198_v22  ;;  %1107 = vadd.xlane.f32.xlu2 %v1106_v23  ;;  %v1291_v23 = vperm.slane %v1771_v62, 6 }
 0xf17   :  { %v1451_v24 = vpop.eup %1450 }
 0xf18   :  { %v1202_v26 = vadd.f32 1.0, %v1451_v24 }
 0xf1a   :  { %v1204_v27 = vmul.f32 %v1202_v26, %v1188_v25  ;;  %v1294_v26 = vperm.slane %v1771_v62, 7 }
 0xf1c   :  { %1383 = vmatmul.msk.f32.vlgmr.msra.gmra.mxu3 %vm616_vm1, %v1204_v27 }
 0xf84   :  { %v1108_v28 = vpop.xlane.xlu2 %1107 }
 0xf85   :  { %v1110_v29 = vmul.f32 %v1108_v28, %v1544_v8 }
 0xf87   :  { %v1112_v30 = vsub.f32 %v1102_v38, %v1110_v29 }
 0xf89   :  { %v1114_v34 = vmul.f32 %v1112_v30, %v1112_v30 }
 0xf8b   :  { %v1118_v19 = vsel %vm34_vm0, %v1114_v34, 0.0 }
 0xf8c   :  { %1119 = vadd.xlane.f32.xlu1 %v1118_v19 }
 0xf9f   :  { %v1239_v35 = vpop.f32.mrf.mxu3 }
 0xfa0   :  { %v1240_v37 = vadd.f32 %v1239_v35, %v1215_v31 }
 0xfa2   :  { %v1245_v61 = vadd.f32 %v1240_v37, %v1151_v63 }
 0xfa4   :  { %v1247_v39 = vsel %vm34_vm0, %v1245_v61, 0.0 }
 0xfa5   :  { %1248 = vadd.xlane.f32.xlu0 %v1247_v39 }
 0xfff   :  { %v1120_v40 = vpop.xlane.xlu1 %1119 }
0x1000   :  { %v1122_v41 = vmul.f32 %v1120_v40, %v1544_v8 }
0x1002   :  { %v1124_v42 = vadd.f32 1e-12, %v1122_v41 }
0x1004   :  { %1452 = vrsqrt.f32 %v1124_v42  ;;  %vm1141_vm12 = vweird.f32 %v1124_v42 }
0x100a   :  { %v1453_v43 = vpop.eup %1452 }
0x100b   :  { %v1136_v36 = vmul.f32 %v1453_v43, %v1124_v42  ;;  %vm1142_vm5 = vweird.f32 %v1453_v43 }
0x100c   :  { %vm1143_vm13 = vmor %vm1141_vm12, %vm1142_vm5 }
0x100d   :  { %v1137_v44 = vmul.f32 %v1453_v43, %v1136_v36 }
0x100f   :  { %v1138_v45 = vmul.f32 0.5, %v1137_v44 }
0x1011   :  { %v1139_v47 = vsub.f32 1.5, %v1138_v45 }
0x1013   :  { %v1140_v46 = vmul.f32 %v1453_v43, %v1139_v47 }
0x1015   :  { %v1144_v48 = vsel %vm1143_vm13, %v1453_v43, %v1140_v46 }
0x1016   :  { %v1146_v49 = vmul.f32 %v1144_v48, %v1112_v30 }
0x1018   :  { %v1149_v50 = vmul.f32 %v1147_v56, %v1146_v49  ;;  %v1249_v56 = vpop.xlane.xlu0 %1248 }
0x101a   :  { %v1152_v51 = vadd.f32 %v1150_v59, %v1149_v50  ;;  %v1253_v59 = vmul.f32 %v1249_v56, %v1544_v8 }
0x101c   :  { %1374 = vmatmul.msk.f32.gmra.mxu1 %vm34_vm0, %v1152_v51  ;;  %v1255_v5 = vsub.f32 %v1245_v61, %v1253_v59 }
0x101e   :  { %v1257_v7 = vmul.f32 %v1255_v5, %v1255_v5 }
0x1020   :  { %v1259_v9 = vsel %vm34_vm0, %v1257_v7, 0.0 }
0x1099   :  { %v1185_v4 = vpop.f32.mrf.mxu1 }
0x109a   :  { %v1186_v52 = vadd.f32 %v1185_v4, %v1158_v32 }
0x109c   :  { %v1191_v53 = vmul.f32 0.044715, %v1186_v52  ;;  %v1189_v63 = vmul.f32 0.5, %v1186_v52 }
0x109e   :  { %v1193_v54 = vmul.f32 %v1191_v53, %v1186_v52 }
0x10a0   :  { %v1195_v55 = vmul.f32 %v1193_v54, %v1186_v52 }
0x10a2   :  { %v1197_v57 = vadd.f32 %v1195_v55, %v1186_v52 }
0x10a4   :  { %v1199_v58 = vmul.f32 0.7978846, %v1197_v57 }
0x10a6   :  { %1454 = vtanh.f32 %v1199_v58 }
0x10ac   :  { %v1455_v60 = vpop.eup %1454 }
0x10ad   :  { %v1203_v0 = vadd.f32 1.0, %v1455_v60 }
0x10af   :  { %v1205_v1 = vmul.f32 %v1203_v0, %v1189_v63 }
0x10b1   :  { %1384 = vmatmul.msk.f32.gmra.mxu3 %vm616_vm1, %v1205_v1 }
0x1134   :  { %v1242_v33 = vpop.f32.mrf.mxu3 }
0x1135   :  { %v1243_v2 = vadd.f32 %v1242_v33, %v1215_v31 }
0x1137   :  { %v1246_v3 = vadd.f32 %v1243_v2, %v1152_v51 }
0x1139   :  { %v1250_v6 = vsel %vm34_vm0, %v1246_v3, 0.0 }
0x113a   :  { %1251 = vadd.xlane.f32.xlu1 %v1250_v6 }
0x1142   :  { %1260 = vadd.xlane.f32.xlu1 %v1259_v9 }
0x11ad   :  { %v1252_v10 = vpop.xlane.xlu1 %1251 }
0x11ae   :  { %v1254_v32 = vmul.f32 %v1252_v10, %v1544_v8 }
0x11b0   :  { %v1256_v11 = vsub.f32 %v1246_v3, %v1254_v32 }
0x11b2   :  { %v1258_v12 = vmul.f32 %v1256_v11, %v1256_v11 }
0x11b4   :  { %v1262_v13 = vsel %vm34_vm0, %v1258_v12, 0.0  ;;  %vm1297_vm0 = vcmask 253952  }
0x11b5   :  { %1263 = vadd.xlane.f32.xlu1 %v1262_v13  ;;  %v1261_v14 = vpop.xlane.xlu1 %1260 }
0x11b6   :  { %v1265_v15 = vmul.f32 %v1261_v14, %v1544_v8 }
0x11b8   :  { %v1267_v16 = vadd.f32 1e-12, %v1265_v15 }
0x11ba   :  { %1456 = vrsqrt.f32 %v1267_v16  ;;  %vm1275_vm15 = vweird.f32 %v1267_v16 }
0x11c0   :  { %v1457_v17 = vpop.eup %1456 }
0x11c1   :  { %v1270_v18 = vmul.f32 %v1457_v17, %v1267_v16  ;;  %vm1276_vm14 = vweird.f32 %v1457_v17 }
0x11c2   :  { %vm1277_vm1 = vmor %vm1275_vm15, %vm1276_vm14 }
0x11c3   :  { %v1271_v20 = vmul.f32 %v1457_v17, %v1270_v18 }
0x11c5   :  { %v1272_v21 = vmul.f32 0.5, %v1271_v20 }
0x11c7   :  { %v1273_v38 = vsub.f32 1.5, %v1272_v21 }
0x11c9   :  { %v1274_v22 = vmul.f32 %v1457_v17, %v1273_v38 }
0x11cb   :  { %v1278_v24 = vsel %vm1277_vm1, %v1457_v17, %v1274_v22 }
0x11cc   :  { %v1289_v25 = vmul.f32 %v1278_v24, %v1255_v5 }
0x11ce   :  { %v1292_v27 = vmul.f32 %v1291_v23, %v1289_v25 }
0x11d0   :  { %v1295_v28 = vadd.f32 %v1294_v26, %v1292_v27 }
0x11d2   :  { %1298 = vst.msk [vmem:[#allocation2] sm:$0x1] %vm1297_vm0, %v1295_v28 }
0x1228   :  { %v1264_v29 = vpop.xlane.xlu1 %1263 }
0x1229   :  { %v1266_v30 = vmul.f32 %v1264_v29, %v1544_v8 }
0x122b   :  { %v1268_v34 = vadd.f32 1e-12, %v1266_v30 }
0x122d   :  { %1458 = vrsqrt.f32 %v1268_v34  ;;  %vm1285_vm3 = vweird.f32 %v1268_v34 }
0x1233   :  { %v1459_v19 = vpop.eup %1458 }
0x1234   :  { %v1280_v31 = vmul.f32 %v1459_v19, %v1268_v34  ;;  %vm1286_vm2 = vweird.f32 %v1459_v19 }
0x1235   :  { %vm1287_vm4 = vmor %vm1285_vm3, %vm1286_vm2 }
0x1236   :  { %v1281_v35 = vmul.f32 %v1459_v19, %v1280_v31 }
0x1238   :  { %v1282_v37 = vmul.f32 0.5, %v1281_v35 }
0x123a   :  { %v1283_v61 = vsub.f32 1.5, %v1282_v37 }
0x123c   :  { %v1284_v39 = vmul.f32 %v1459_v19, %v1283_v61 }
0x123e   :  { %v1288_v62 = vsel %vm1287_vm4, %v1459_v19, %v1284_v39 }
0x123f   :  { %v1290_v40 = vmul.f32 %v1288_v62, %v1256_v11 }
0x1241   :  { %v1293_v8 = vmul.f32 %v1291_v23, %v1290_v40 }
0x1243   :  { %v1296_v41 = vadd.f32 %v1294_v26, %v1293_v8 }
0x1245   :  { %1300 = vst.msk [vmem:[#allocation2 + $0x1] sm:$0x1] %vm1297_vm0, %v1296_v41 }
0x1246   :  { %1313 = dma.vmem_to_hbm [thread:$0]  %s1306_s22, 32, %s1308_s11, [#allocation3], %s1493_s12, %s1493_s12, %s1494_s3  }
0x1247   :  { %1484 = dma.done.wait [#allocation3], 32  }
0x1248   :  { %1485 = vsyncadd [#allocation3], 4294967264 }
0x1249   :  { %1318 = vsyncpa [#allocation3], 1 }

</bundles_post_ra>
